<compile_context>
chip_gen: v5e
topology: v5e:2x2
jax: 0.10.0
libtpu: 0.0.40
codegen_flags: <defaults>
</compile_context>

<pallas_src>
import functools

import jax
import jax.numpy as jnp
from jax import lax
from jax.experimental import pallas as pl
from jax.experimental.pallas import tpu as pltpu


def _round_up(x, m):
    return ((x + m - 1) // m) * m


# ----------------------------- fused kernel -------------------------------- #

def make_fused_lstm_kernel(num_layers, seq_len, batch_pad, hidden_dim):
    """Builds the fused kernel (num_layers LSTM layers + FC + softmax)."""
    T, B, H = seq_len, batch_pad, hidden_dim
    G = 4 * H

    def kernel(x_ref, *refs):
        # refs = [wih_0, whh_0, bias_0, ..., wih_{L-1}, whh_{L-1}, bias_{L-1},
        #         w_fc, b_fc, out_ref]
        layer_refs = refs[: 3 * num_layers]
        w_fc_ref = refs[3 * num_layers + 0]
        b_fc_ref = refs[3 * num_layers + 1]
        out_ref = refs[3 * num_layers + 2]

        # Lane mask selecting the 'g' (cell-candidate) block so activations run
        # as one full-vreg tanh + one full-vreg sigmoid (hoisted, constant).
        lane = lax.broadcasted_iota(jnp.int32, (B, G), 1)
        g_mask = (lane >= 2 * H) & (lane < 3 * H)

        seq2d = x_ref[...]                       # (T*B, D_in), time-major
        h = jnp.zeros((B, H), jnp.float32)

        for l in range(num_layers):
            wih = layer_refs[3 * l + 0][...]     # (D_in, 4H)
            whh = layer_refs[3 * l + 1][...]     # (H, 4H)
            bias = layer_refs[3 * l + 2][...]    # (1, 4H)

            # Hoisted input projection: one big matmul instead of T tiny ones.
            xw = jnp.dot(seq2d, wih, preferred_element_type=jnp.float32) + bias

            h = jnp.zeros((B, H), jnp.float32)
            c = jnp.zeros((B, H), jnp.float32)
            hs = []
            for t in range(T):                   # static T -> fully unrolled
                gates = xw[t * B:(t + 1) * B, :] + jnp.dot(
                    h, whh, preferred_element_type=jnp.float32)       # (B, 4H)
                act = jnp.where(g_mask, jnp.tanh(gates), jax.nn.sigmoid(gates))
                i_g = act[:, 0 * H:1 * H]
                f_g = act[:, 1 * H:2 * H]
                g_g = act[:, 2 * H:3 * H]
                o_g = act[:, 3 * H:4 * H]
                c = f_g * c + i_g * g_g
                h = o_g * jnp.tanh(c)
                hs.append(h)

            if l + 1 < num_layers:
                # Hidden sequence for the next layer stays on-chip.
                seq2d = jnp.concatenate(hs, axis=0)    # (T*B, H)

        # FC + softmax on the last layer's final hidden state.  Output is
        # lane-dense (O padded to 128); padded columns carry a -1e30 bias so
        # exp() underflows to exactly 0 in the denominator.
        logits = (jnp.dot(h, w_fc_ref[...], preferred_element_type=jnp.float32)
                  + b_fc_ref[...])                     # (B, O_pad)
        m = jnp.max(logits, axis=-1, keepdims=True)
        e = jnp.exp(logits - m)
        out_ref[...] = e / jnp.sum(e, axis=-1, keepdims=True)

    return kernel


# ----------------------------- wrapper -------------------------------------- #

@functools.partial(
    jax.jit,
    static_argnames=("window_size", "num_layers", "hidden_dim", "output_dim"))
def simple_lstm_forward(x, params, *, window_size, num_layers, hidden_dim,
                        output_dim):
    """Mirrors SimpleLSTM.forward with a single fused Pallas kernel."""
    B = x.shape[0]
    T = window_size
    x3 = x.reshape(B, T, -1).astype(jnp.float32)   # (B, T, D_in)
    D = x3.shape[-1]
    H = hidden_dim

    B_pad = _round_up(B, 8)                        # sublane-aligned batch
    O_pad = params["w_fc_t"].shape[1]              # lane-dense output width

    # Layout plumbing (outside the kernel): time-major, batch padded, 2-D.
    xt = jnp.transpose(x3, (1, 0, 2))              # (T, B, D)
    xt = jnp.pad(xt, ((0, 0), (0, B_pad - B), (0, 0)))
    x2d = xt.reshape(T * B_pad, D)

    args = [x2d]
    for l in range(num_layers):
        args += [params[f"wih_t_{l}"], params[f"whh_t_{l}"], params[f"bias_{l}"]]
    args += [params["w_fc_t"], params["b_fc"]]

    vmem = pl.BlockSpec(memory_space=pltpu.MemorySpace.VMEM)
    out = pl.pallas_call(
        make_fused_lstm_kernel(num_layers, T, B_pad, H),
        out_shape=jax.ShapeDtypeStruct((B_pad, O_pad), jnp.float32),
        in_specs=[vmem] * len(args),
        out_specs=vmem,
    )(*args)

    return out[:B, :output_dim]


# ----------------------------- param init ----------------------------------- #

def init_params(key, input_dim, hidden_dim, output_dim, num_layers):
    """PyTorch-style uniform(-1/sqrt(H), 1/sqrt(H)) init; stored pre-transposed
    (and FC padded to a lane-dense width) for the kernel."""
    params = {}
    bound = 1.0 / jnp.sqrt(jnp.float32(hidden_dim))
    for l in range(num_layers):
        d_in = input_dim if l == 0 else hidden_dim
        key, k1, k2, k3, k4 = jax.random.split(key, 5)
        w_ih = jax.random.uniform(k1, (4 * hidden_dim, d_in), jnp.float32, -bound, bound)
        w_hh = jax.random.uniform(k2, (4 * hidden_dim, hidden_dim), jnp.float32, -bound, bound)
        b_ih = jax.random.uniform(k3, (4 * hidden_dim,), jnp.float32, -bound, bound)
        b_hh = jax.random.uniform(k4, (4 * hidden_dim,), jnp.float32, -bound, bound)
        params[f"wih_t_{l}"] = jnp.transpose(w_ih)          # (d_in, 4H)
        params[f"whh_t_{l}"] = jnp.transpose(w_hh)          # (H, 4H)
        params[f"bias_{l}"] = (b_ih + b_hh)[None, :]        # (1, 4H)

    key, k1, k2 = jax.random.split(key, 3)
    w_fc = jax.random.uniform(k1, (output_dim, hidden_dim), jnp.float32, -bound, bound)
    b_fc = jax.random.uniform(k2, (output_dim,), jnp.float32, -bound, bound)

    o_pad = _round_up(max(output_dim, 128), 128)
    w_fc_t = jnp.zeros((hidden_dim, o_pad), jnp.float32)
    w_fc_t = w_fc_t.at[:, :output_dim].set(jnp.transpose(w_fc))
    b_fc_p = jnp.full((1, o_pad), -1e30, jnp.float32)       # padded logits -> 0 prob
    b_fc_p = b_fc_p.at[0, :output_dim].set(b_fc)
    params["w_fc_t"] = w_fc_t                                # (H, O_pad)
    params["b_fc"] = b_fc_p                                  # (1, O_pad)
    return params


# ----------------------------- pure-JAX reference ---------------------------- #

def reference_forward(x, params, *, window_size, num_layers, hidden_dim,
                      output_dim):
    B = x.shape[0]
    H = hidden_dim
    hp = lax.Precision.HIGHEST
    x3 = x.reshape(B, window_size, -1).astype(jnp.float32)
    seq = jnp.transpose(x3, (1, 0, 2))                       # (T, B, D)
    h = jnp.zeros((B, H), jnp.float32)
    for l in range(num_layers):
        wih = params[f"wih_t_{l}"]
        whh = params[f"whh_t_{l}"]
        b = params[f"bias_{l}"]
        h = jnp.zeros((B, H), jnp.float32)
        c = jnp.zeros((B, H), jnp.float32)
        outs = []
        for t in range(window_size):
            gates = (jnp.dot(seq[t], wih, precision=hp)
                     + jnp.dot(h, whh, precision=hp) + b)
            i = jax.nn.sigmoid(gates[:, 0 * H:1 * H])
            f = jax.nn.sigmoid(gates[:, 1 * H:2 * H])
            g = jnp.tanh(gates[:, 2 * H:3 * H])
            o = jax.nn.sigmoid(gates[:, 3 * H:4 * H])
            c = f * c + i * g
            h = o * jnp.tanh(c)
            outs.append(h)
        seq = jnp.stack(outs, axis=0)
    logits = (jnp.dot(h, params["w_fc_t"][:, :output_dim], precision=hp)
              + params["b_fc"][:, :output_dim])
    return jax.nn.softmax(logits, axis=1)


# ----------------------------- main ------------------------------------------ #

if __name__ == "__main__":
    batch = 2
    window_size = 8
    input_dim = 4
    hidden_dim = 32
    output_dim = 3
    num_layers = 2

    key = jax.random.PRNGKey(0)
    key, kx = jax.random.split(key)
    x = jax.random.normal(kx, (batch, window_size, input_dim), jnp.float32)

    params = init_params(key, input_dim, hidden_dim, output_dim, num_layers)

    out = simple_lstm_forward(
        x, params, window_size=window_size, num_layers=num_layers,
        hidden_dim=hidden_dim, output_dim=output_dim)
    out = jax.block_until_ready(out)

    assert out.shape == (batch, output_dim)
    # Softmax rows should sum to 1 (padded lanes contribute exactly 0).
    assert bool(jnp.allclose(jnp.sum(out, axis=1), 1.0, atol=1e-5))

    # Cross-check against a pure-JAX reference (loose tol absorbs any
    # MXU f32-emulation vs HIGHEST-precision XLA matmul differences).
    ref = reference_forward(
        x, params, window_size=window_size, num_layers=num_layers,
        hidden_dim=hidden_dim, output_dim=output_dim)
    assert bool(jnp.allclose(out, ref, atol=1e-2))

    print("KERNEL_OK")
</pallas_src>

<mosaic_0001>
module attributes {stable_mosaic.version = 11 : i64} {
  func.func @kernel(%arg0: memref<64x4xf32, #tpu.memory_space<vmem>>, %arg1: memref<4x128xf32, #tpu.memory_space<vmem>>, %arg2: memref<32x128xf32, #tpu.memory_space<vmem>>, %arg3: memref<1x128xf32, #tpu.memory_space<vmem>>, %arg4: memref<32x128xf32, #tpu.memory_space<vmem>>, %arg5: memref<32x128xf32, #tpu.memory_space<vmem>>, %arg6: memref<1x128xf32, #tpu.memory_space<vmem>>, %arg7: memref<32x128xf32, #tpu.memory_space<vmem>>, %arg8: memref<1x128xf32, #tpu.memory_space<vmem>>, %arg9: memref<8x128xf32, #tpu.memory_space<vmem>>) attributes {dimension_semantics = [], scalar_prefetch = 0 : i64, scratch_operands = 0 : i64, tpu.core_type = #tpu.core_type<tc>} {
    %0 = tpu.iota {dimensions = array<i32: 1>} : vector<8x128xi32>
    %c64_i32 = arith.constant 64 : i32
    %1 = vector.broadcast %c64_i32 : i32 to vector<8x128xi32>
    %2 = arith.cmpi sge, %0, %1 : vector<8x128xi32>
    %c96_i32 = arith.constant 96 : i32
    %3 = vector.broadcast %c96_i32 : i32 to vector<8x128xi32>
    %4 = arith.cmpi slt, %0, %3 : vector<8x128xi32>
    %5 = arith.andi %2, %4 : vector<8x128xi1>
    %c0 = arith.constant 0 : index
    %c0_0 = arith.constant 0 : index
    %6 = vector.load %arg0[%c0, %c0_0] : memref<64x4xf32, #tpu.memory_space<vmem>>, vector<64x4xf32>
    %c0_1 = arith.constant 0 : index
    %c0_2 = arith.constant 0 : index
    %7 = vector.load %arg1[%c0_1, %c0_2] : memref<4x128xf32, #tpu.memory_space<vmem>>, vector<4x128xf32>
    %c0_3 = arith.constant 0 : index
    %c0_4 = arith.constant 0 : index
    %8 = vector.load %arg2[%c0_3, %c0_4] : memref<32x128xf32, #tpu.memory_space<vmem>>, vector<32x128xf32>
    %c0_5 = arith.constant 0 : index
    %c0_6 = arith.constant 0 : index
    %9 = vector.load %arg3[%c0_5, %c0_6] : memref<1x128xf32, #tpu.memory_space<vmem>>, vector<1x128xf32>
    %cst = arith.constant dense<0.000000e+00> : vector<64x128xf32>
    %10 = tpu.matmul %6, %7, %cst {dimension_numbers = #tpu.dot_dimension_numbers<[1], [0], [0], [1], [0, 0, 1, 1], [], []>} : vector<64x4xf32>, vector<4x128xf32>, vector<64x128xf32> -> vector<64x128xf32>
    %11 = vector.broadcast %9 : vector<1x128xf32> to vector<64x128xf32>
    %12 = arith.addf %10, %11 : vector<64x128xf32>
    %cst_7 = arith.constant 0.000000e+00 : f32
    %13 = vector.broadcast %cst_7 : f32 to vector<8x32xf32>
    %cst_8 = arith.constant 0.000000e+00 : f32
    %14 = vector.broadcast %cst_8 : f32 to vector<8x32xf32>
    %15 = vector.extract_strided_slice %12 {offsets = [0, 0], sizes = [8, 128], strides = [1, 1]} : vector<64x128xf32> to vector<8x128xf32>
    %cst_9 = arith.constant dense<0.000000e+00> : vector<8x128xf32>
    %16 = tpu.matmul %13, %8, %cst_9 {dimension_numbers = #tpu.dot_dimension_numbers<[1], [0], [0], [1], [0, 0, 1, 1], [], []>} : vector<8x32xf32>, vector<32x128xf32>, vector<8x128xf32> -> vector<8x128xf32>
    %17 = arith.addf %15, %16 : vector<8x128xf32>
    %18 = math.tanh %17 : vector<8x128xf32>
    %19 = arith.negf %17 : vector<8x128xf32>
    %20 = math.exp %19 : vector<8x128xf32>
    %cst_10 = arith.constant 1.000000e+00 : f32
    %21 = vector.broadcast %cst_10 : f32 to vector<8x128xf32>
    %22 = arith.addf %21, %20 : vector<8x128xf32>
    %23 = arith.divf %21, %22 : vector<8x128xf32>
    %24 = arith.select %5, %18, %23 : vector<8x128xi1>, vector<8x128xf32>
    %25 = vector.extract_strided_slice %24 {offsets = [0, 0], sizes = [8, 32], strides = [1, 1]} : vector<8x128xf32> to vector<8x32xf32>
    %26 = vector.extract_strided_slice %24 {offsets = [0, 32], sizes = [8, 32], strides = [1, 1]} : vector<8x128xf32> to vector<8x32xf32>
    %27 = vector.extract_strided_slice %24 {offsets = [0, 64], sizes = [8, 32], strides = [1, 1]} : vector<8x128xf32> to vector<8x32xf32>
    %28 = vector.extract_strided_slice %24 {offsets = [0, 96], sizes = [8, 32], strides = [1, 1]} : vector<8x128xf32> to vector<8x32xf32>
    %29 = arith.mulf %26, %14 : vector<8x32xf32>
    %30 = arith.mulf %25, %27 : vector<8x32xf32>
    %31 = arith.addf %29, %30 : vector<8x32xf32>
    %32 = math.tanh %31 : vector<8x32xf32>
    %33 = arith.mulf %28, %32 : vector<8x32xf32>
    %34 = vector.extract_strided_slice %12 {offsets = [8, 0], sizes = [8, 128], strides = [1, 1]} : vector<64x128xf32> to vector<8x128xf32>
    %cst_11 = arith.constant dense<0.000000e+00> : vector<8x128xf32>
    %35 = tpu.matmul %33, %8, %cst_11 {dimension_numbers = #tpu.dot_dimension_numbers<[1], [0], [0], [1], [0, 0, 1, 1], [], []>} : vector<8x32xf32>, vector<32x128xf32>, vector<8x128xf32> -> vector<8x128xf32>
    %36 = arith.addf %34, %35 : vector<8x128xf32>
    %37 = math.tanh %36 : vector<8x128xf32>
    %38 = arith.negf %36 : vector<8x128xf32>
    %39 = math.exp %38 : vector<8x128xf32>
    %cst_12 = arith.constant 1.000000e+00 : f32
    %40 = vector.broadcast %cst_12 : f32 to vector<8x128xf32>
    %41 = arith.addf %40, %39 : vector<8x128xf32>
    %42 = arith.divf %40, %41 : vector<8x128xf32>
    %43 = arith.select %5, %37, %42 : vector<8x128xi1>, vector<8x128xf32>
    %44 = vector.extract_strided_slice %43 {offsets = [0, 0], sizes = [8, 32], strides = [1, 1]} : vector<8x128xf32> to vector<8x32xf32>
    %45 = vector.extract_strided_slice %43 {offsets = [0, 32], sizes = [8, 32], strides = [1, 1]} : vector<8x128xf32> to vector<8x32xf32>
    %46 = vector.extract_strided_slice %43 {offsets = [0, 64], sizes = [8, 32], strides = [1, 1]} : vector<8x128xf32> to vector<8x32xf32>
    %47 = vector.extract_strided_slice %43 {offsets = [0, 96], sizes = [8, 32], strides = [1, 1]} : vector<8x128xf32> to vector<8x32xf32>
    %48 = arith.mulf %45, %31 : vector<8x32xf32>
    %49 = arith.mulf %44, %46 : vector<8x32xf32>
    %50 = arith.addf %48, %49 : vector<8x32xf32>
    %51 = math.tanh %50 : vector<8x32xf32>
    %52 = arith.mulf %47, %51 : vector<8x32xf32>
    %53 = vector.extract_strided_slice %12 {offsets = [16, 0], sizes = [8, 128], strides = [1, 1]} : vector<64x128xf32> to vector<8x128xf32>
    %cst_13 = arith.constant dense<0.000000e+00> : vector<8x128xf32>
    %54 = tpu.matmul %52, %8, %cst_13 {dimension_numbers = #tpu.dot_dimension_numbers<[1], [0], [0], [1], [0, 0, 1, 1], [], []>} : vector<8x32xf32>, vector<32x128xf32>, vector<8x128xf32> -> vector<8x128xf32>
    %55 = arith.addf %53, %54 : vector<8x128xf32>
    %56 = math.tanh %55 : vector<8x128xf32>
    %57 = arith.negf %55 : vector<8x128xf32>
    %58 = math.exp %57 : vector<8x128xf32>
    %cst_14 = arith.constant 1.000000e+00 : f32
    %59 = vector.broadcast %cst_14 : f32 to vector<8x128xf32>
    %60 = arith.addf %59, %58 : vector<8x128xf32>
    %61 = arith.divf %59, %60 : vector<8x128xf32>
    %62 = arith.select %5, %56, %61 : vector<8x128xi1>, vector<8x128xf32>
    %63 = vector.extract_strided_slice %62 {offsets = [0, 0], sizes = [8, 32], strides = [1, 1]} : vector<8x128xf32> to vector<8x32xf32>
    %64 = vector.extract_strided_slice %62 {offsets = [0, 32], sizes = [8, 32], strides = [1, 1]} : vector<8x128xf32> to vector<8x32xf32>
    %65 = vector.extract_strided_slice %62 {offsets = [0, 64], sizes = [8, 32], strides = [1, 1]} : vector<8x128xf32> to vector<8x32xf32>
    %66 = vector.extract_strided_slice %62 {offsets = [0, 96], sizes = [8, 32], strides = [1, 1]} : vector<8x128xf32> to vector<8x32xf32>
    %67 = arith.mulf %64, %50 : vector<8x32xf32>
    %68 = arith.mulf %63, %65 : vector<8x32xf32>
    %69 = arith.addf %67, %68 : vector<8x32xf32>
    %70 = math.tanh %69 : vector<8x32xf32>
    %71 = arith.mulf %66, %70 : vector<8x32xf32>
    %72 = vector.extract_strided_slice %12 {offsets = [24, 0], sizes = [8, 128], strides = [1, 1]} : vector<64x128xf32> to vector<8x128xf32>
    %cst_15 = arith.constant dense<0.000000e+00> : vector<8x128xf32>
    %73 = tpu.matmul %71, %8, %cst_15 {dimension_numbers = #tpu.dot_dimension_numbers<[1], [0], [0], [1], [0, 0, 1, 1], [], []>} : vector<8x32xf32>, vector<32x128xf32>, vector<8x128xf32> -> vector<8x128xf32>
    %74 = arith.addf %72, %73 : vector<8x128xf32>
    %75 = math.tanh %74 : vector<8x128xf32>
    %76 = arith.negf %74 : vector<8x128xf32>
    %77 = math.exp %76 : vector<8x128xf32>
    %cst_16 = arith.constant 1.000000e+00 : f32
    %78 = vector.broadcast %cst_16 : f32 to vector<8x128xf32>
    %79 = arith.addf %78, %77 : vector<8x128xf32>
    %80 = arith.divf %78, %79 : vector<8x128xf32>
    %81 = arith.select %5, %75, %80 : vector<8x128xi1>, vector<8x128xf32>
    %82 = vector.extract_strided_slice %81 {offsets = [0, 0], sizes = [8, 32], strides = [1, 1]} : vector<8x128xf32> to vector<8x32xf32>
    %83 = vector.extract_strided_slice %81 {offsets = [0, 32], sizes = [8, 32], strides = [1, 1]} : vector<8x128xf32> to vector<8x32xf32>
    %84 = vector.extract_strided_slice %81 {offsets = [0, 64], sizes = [8, 32], strides = [1, 1]} : vector<8x128xf32> to vector<8x32xf32>
    %85 = vector.extract_strided_slice %81 {offsets = [0, 96], sizes = [8, 32], strides = [1, 1]} : vector<8x128xf32> to vector<8x32xf32>
    %86 = arith.mulf %83, %69 : vector<8x32xf32>
    %87 = arith.mulf %82, %84 : vector<8x32xf32>
    %88 = arith.addf %86, %87 : vector<8x32xf32>
    %89 = math.tanh %88 : vector<8x32xf32>
    %90 = arith.mulf %85, %89 : vector<8x32xf32>
    %91 = vector.extract_strided_slice %12 {offsets = [32, 0], sizes = [8, 128], strides = [1, 1]} : vector<64x128xf32> to vector<8x128xf32>
    %cst_17 = arith.constant dense<0.000000e+00> : vector<8x128xf32>
    %92 = tpu.matmul %90, %8, %cst_17 {dimension_numbers = #tpu.dot_dimension_numbers<[1], [0], [0], [1], [0, 0, 1, 1], [], []>} : vector<8x32xf32>, vector<32x128xf32>, vector<8x128xf32> -> vector<8x128xf32>
    %93 = arith.addf %91, %92 : vector<8x128xf32>
    %94 = math.tanh %93 : vector<8x128xf32>
    %95 = arith.negf %93 : vector<8x128xf32>
    %96 = math.exp %95 : vector<8x128xf32>
    %cst_18 = arith.constant 1.000000e+00 : f32
    %97 = vector.broadcast %cst_18 : f32 to vector<8x128xf32>
    %98 = arith.addf %97, %96 : vector<8x128xf32>
    %99 = arith.divf %97, %98 : vector<8x128xf32>
    %100 = arith.select %5, %94, %99 : vector<8x128xi1>, vector<8x128xf32>
    %101 = vector.extract_strided_slice %100 {offsets = [0, 0], sizes = [8, 32], strides = [1, 1]} : vector<8x128xf32> to vector<8x32xf32>
    %102 = vector.extract_strided_slice %100 {offsets = [0, 32], sizes = [8, 32], strides = [1, 1]} : vector<8x128xf32> to vector<8x32xf32>
    %103 = vector.extract_strided_slice %100 {offsets = [0, 64], sizes = [8, 32], strides = [1, 1]} : vector<8x128xf32> to vector<8x32xf32>
    %104 = vector.extract_strided_slice %100 {offsets = [0, 96], sizes = [8, 32], strides = [1, 1]} : vector<8x128xf32> to vector<8x32xf32>
    %105 = arith.mulf %102, %88 : vector<8x32xf32>
    %106 = arith.mulf %101, %103 : vector<8x32xf32>
    %107 = arith.addf %105, %106 : vector<8x32xf32>
    %108 = math.tanh %107 : vector<8x32xf32>
    %109 = arith.mulf %104, %108 : vector<8x32xf32>
    %110 = vector.extract_strided_slice %12 {offsets = [40, 0], sizes = [8, 128], strides = [1, 1]} : vector<64x128xf32> to vector<8x128xf32>
    %cst_19 = arith.constant dense<0.000000e+00> : vector<8x128xf32>
    %111 = tpu.matmul %109, %8, %cst_19 {dimension_numbers = #tpu.dot_dimension_numbers<[1], [0], [0], [1], [0, 0, 1, 1], [], []>} : vector<8x32xf32>, vector<32x128xf32>, vector<8x128xf32> -> vector<8x128xf32>
    %112 = arith.addf %110, %111 : vector<8x128xf32>
    %113 = math.tanh %112 : vector<8x128xf32>
    %114 = arith.negf %112 : vector<8x128xf32>
    %115 = math.exp %114 : vector<8x128xf32>
    %cst_20 = arith.constant 1.000000e+00 : f32
    %116 = vector.broadcast %cst_20 : f32 to vector<8x128xf32>
    %117 = arith.addf %116, %115 : vector<8x128xf32>
    %118 = arith.divf %116, %117 : vector<8x128xf32>
    %119 = arith.select %5, %113, %118 : vector<8x128xi1>, vector<8x128xf32>
    %120 = vector.extract_strided_slice %119 {offsets = [0, 0], sizes = [8, 32], strides = [1, 1]} : vector<8x128xf32> to vector<8x32xf32>
    %121 = vector.extract_strided_slice %119 {offsets = [0, 32], sizes = [8, 32], strides = [1, 1]} : vector<8x128xf32> to vector<8x32xf32>
    %122 = vector.extract_strided_slice %119 {offsets = [0, 64], sizes = [8, 32], strides = [1, 1]} : vector<8x128xf32> to vector<8x32xf32>
    %123 = vector.extract_strided_slice %119 {offsets = [0, 96], sizes = [8, 32], strides = [1, 1]} : vector<8x128xf32> to vector<8x32xf32>
    %124 = arith.mulf %121, %107 : vector<8x32xf32>
    %125 = arith.mulf %120, %122 : vector<8x32xf32>
    %126 = arith.addf %124, %125 : vector<8x32xf32>
    %127 = math.tanh %126 : vector<8x32xf32>
    %128 = arith.mulf %123, %127 : vector<8x32xf32>
    %129 = vector.extract_strided_slice %12 {offsets = [48, 0], sizes = [8, 128], strides = [1, 1]} : vector<64x128xf32> to vector<8x128xf32>
    %cst_21 = arith.constant dense<0.000000e+00> : vector<8x128xf32>
    %130 = tpu.matmul %128, %8, %cst_21 {dimension_numbers = #tpu.dot_dimension_numbers<[1], [0], [0], [1], [0, 0, 1, 1], [], []>} : vector<8x32xf32>, vector<32x128xf32>, vector<8x128xf32> -> vector<8x128xf32>
    %131 = arith.addf %129, %130 : vector<8x128xf32>
    %132 = math.tanh %131 : vector<8x128xf32>
    %133 = arith.negf %131 : vector<8x128xf32>
    %134 = math.exp %133 : vector<8x128xf32>
    %cst_22 = arith.constant 1.000000e+00 : f32
    %135 = vector.broadcast %cst_22 : f32 to vector<8x128xf32>
    %136 = arith.addf %135, %134 : vector<8x128xf32>
    %137 = arith.divf %135, %136 : vector<8x128xf32>
    %138 = arith.select %5, %132, %137 : vector<8x128xi1>, vector<8x128xf32>
    %139 = vector.extract_strided_slice %138 {offsets = [0, 0], sizes = [8, 32], strides = [1, 1]} : vector<8x128xf32> to vector<8x32xf32>
    %140 = vector.extract_strided_slice %138 {offsets = [0, 32], sizes = [8, 32], strides = [1, 1]} : vector<8x128xf32> to vector<8x32xf32>
    %141 = vector.extract_strided_slice %138 {offsets = [0, 64], sizes = [8, 32], strides = [1, 1]} : vector<8x128xf32> to vector<8x32xf32>
    %142 = vector.extract_strided_slice %138 {offsets = [0, 96], sizes = [8, 32], strides = [1, 1]} : vector<8x128xf32> to vector<8x32xf32>
    %143 = arith.mulf %140, %126 : vector<8x32xf32>
    %144 = arith.mulf %139, %141 : vector<8x32xf32>
    %145 = arith.addf %143, %144 : vector<8x32xf32>
    %146 = math.tanh %145 : vector<8x32xf32>
    %147 = arith.mulf %142, %146 : vector<8x32xf32>
    %148 = vector.extract_strided_slice %12 {offsets = [56, 0], sizes = [8, 128], strides = [1, 1]} : vector<64x128xf32> to vector<8x128xf32>
    %cst_23 = arith.constant dense<0.000000e+00> : vector<8x128xf32>
    %149 = tpu.matmul %147, %8, %cst_23 {dimension_numbers = #tpu.dot_dimension_numbers<[1], [0], [0], [1], [0, 0, 1, 1], [], []>} : vector<8x32xf32>, vector<32x128xf32>, vector<8x128xf32> -> vector<8x128xf32>
    %150 = arith.addf %148, %149 : vector<8x128xf32>
    %151 = math.tanh %150 : vector<8x128xf32>
    %152 = arith.negf %150 : vector<8x128xf32>
    %153 = math.exp %152 : vector<8x128xf32>
    %cst_24 = arith.constant 1.000000e+00 : f32
    %154 = vector.broadcast %cst_24 : f32 to vector<8x128xf32>
    %155 = arith.addf %154, %153 : vector<8x128xf32>
    %156 = arith.divf %154, %155 : vector<8x128xf32>
    %157 = arith.select %5, %151, %156 : vector<8x128xi1>, vector<8x128xf32>
    %158 = vector.extract_strided_slice %157 {offsets = [0, 0], sizes = [8, 32], strides = [1, 1]} : vector<8x128xf32> to vector<8x32xf32>
    %159 = vector.extract_strided_slice %157 {offsets = [0, 32], sizes = [8, 32], strides = [1, 1]} : vector<8x128xf32> to vector<8x32xf32>
    %160 = vector.extract_strided_slice %157 {offsets = [0, 64], sizes = [8, 32], strides = [1, 1]} : vector<8x128xf32> to vector<8x32xf32>
    %161 = vector.extract_strided_slice %157 {offsets = [0, 96], sizes = [8, 32], strides = [1, 1]} : vector<8x128xf32> to vector<8x32xf32>
    %162 = arith.mulf %159, %145 : vector<8x32xf32>
    %163 = arith.mulf %158, %160 : vector<8x32xf32>
    %164 = arith.addf %162, %163 : vector<8x32xf32>
    %165 = math.tanh %164 : vector<8x32xf32>
    %166 = arith.mulf %161, %165 : vector<8x32xf32>
    %167 = tpu.concatenate %33, %52, %71, %90, %109, %128, %147, %166 in 0 : vector<8x32xf32>, vector<8x32xf32>, vector<8x32xf32>, vector<8x32xf32>, vector<8x32xf32>, vector<8x32xf32>, vector<8x32xf32>, vector<8x32xf32> -> vector<64x32xf32>
    %c0_25 = arith.constant 0 : index
    %c0_26 = arith.constant 0 : index
    %168 = vector.load %arg4[%c0_25, %c0_26] : memref<32x128xf32, #tpu.memory_space<vmem>>, vector<32x128xf32>
    %c0_27 = arith.constant 0 : index
    %c0_28 = arith.constant 0 : index
    %169 = vector.load %arg5[%c0_27, %c0_28] : memref<32x128xf32, #tpu.memory_space<vmem>>, vector<32x128xf32>
    %c0_29 = arith.constant 0 : index
    %c0_30 = arith.constant 0 : index
    %170 = vector.load %arg6[%c0_29, %c0_30] : memref<1x128xf32, #tpu.memory_space<vmem>>, vector<1x128xf32>
    %cst_31 = arith.constant dense<0.000000e+00> : vector<64x128xf32>
    %171 = tpu.matmul %167, %168, %cst_31 {dimension_numbers = #tpu.dot_dimension_numbers<[1], [0], [0], [1], [0, 0, 1, 1], [], []>} : vector<64x32xf32>, vector<32x128xf32>, vector<64x128xf32> -> vector<64x128xf32>
    %172 = vector.broadcast %170 : vector<1x128xf32> to vector<64x128xf32>
    %173 = arith.addf %171, %172 : vector<64x128xf32>
    %cst_32 = arith.constant 0.000000e+00 : f32
    %174 = vector.broadcast %cst_32 : f32 to vector<8x32xf32>
    %cst_33 = arith.constant 0.000000e+00 : f32
    %175 = vector.broadcast %cst_33 : f32 to vector<8x32xf32>
    %176 = vector.extract_strided_slice %173 {offsets = [0, 0], sizes = [8, 128], strides = [1, 1]} : vector<64x128xf32> to vector<8x128xf32>
    %cst_34 = arith.constant dense<0.000000e+00> : vector<8x128xf32>
    %177 = tpu.matmul %174, %169, %cst_34 {dimension_numbers = #tpu.dot_dimension_numbers<[1], [0], [0], [1], [0, 0, 1, 1], [], []>} : vector<8x32xf32>, vector<32x128xf32>, vector<8x128xf32> -> vector<8x128xf32>
    %178 = arith.addf %176, %177 : vector<8x128xf32>
    %179 = math.tanh %178 : vector<8x128xf32>
    %180 = arith.negf %178 : vector<8x128xf32>
    %181 = math.exp %180 : vector<8x128xf32>
    %cst_35 = arith.constant 1.000000e+00 : f32
    %182 = vector.broadcast %cst_35 : f32 to vector<8x128xf32>
    %183 = arith.addf %182, %181 : vector<8x128xf32>
    %184 = arith.divf %182, %183 : vector<8x128xf32>
    %185 = arith.select %5, %179, %184 : vector<8x128xi1>, vector<8x128xf32>
    %186 = vector.extract_strided_slice %185 {offsets = [0, 0], sizes = [8, 32], strides = [1, 1]} : vector<8x128xf32> to vector<8x32xf32>
    %187 = vector.extract_strided_slice %185 {offsets = [0, 32], sizes = [8, 32], strides = [1, 1]} : vector<8x128xf32> to vector<8x32xf32>
    %188 = vector.extract_strided_slice %185 {offsets = [0, 64], sizes = [8, 32], strides = [1, 1]} : vector<8x128xf32> to vector<8x32xf32>
    %189 = vector.extract_strided_slice %185 {offsets = [0, 96], sizes = [8, 32], strides = [1, 1]} : vector<8x128xf32> to vector<8x32xf32>
    %190 = arith.mulf %187, %175 : vector<8x32xf32>
    %191 = arith.mulf %186, %188 : vector<8x32xf32>
    %192 = arith.addf %190, %191 : vector<8x32xf32>
    %193 = math.tanh %192 : vector<8x32xf32>
    %194 = arith.mulf %189, %193 : vector<8x32xf32>
    %195 = vector.extract_strided_slice %173 {offsets = [8, 0], sizes = [8, 128], strides = [1, 1]} : vector<64x128xf32> to vector<8x128xf32>
    %cst_36 = arith.constant dense<0.000000e+00> : vector<8x128xf32>
    %196 = tpu.matmul %194, %169, %cst_36 {dimension_numbers = #tpu.dot_dimension_numbers<[1], [0], [0], [1], [0, 0, 1, 1], [], []>} : vector<8x32xf32>, vector<32x128xf32>, vector<8x128xf32> -> vector<8x128xf32>
    %197 = arith.addf %195, %196 : vector<8x128xf32>
    %198 = math.tanh %197 : vector<8x128xf32>
    %199 = arith.negf %197 : vector<8x128xf32>
    %200 = math.exp %199 : vector<8x128xf32>
    %cst_37 = arith.constant 1.000000e+00 : f32
    %201 = vector.broadcast %cst_37 : f32 to vector<8x128xf32>
    %202 = arith.addf %201, %200 : vector<8x128xf32>
    %203 = arith.divf %201, %202 : vector<8x128xf32>
    %204 = arith.select %5, %198, %203 : vector<8x128xi1>, vector<8x128xf32>
    %205 = vector.extract_strided_slice %204 {offsets = [0, 0], sizes = [8, 32], strides = [1, 1]} : vector<8x128xf32> to vector<8x32xf32>
    %206 = vector.extract_strided_slice %204 {offsets = [0, 32], sizes = [8, 32], strides = [1, 1]} : vector<8x128xf32> to vector<8x32xf32>
    %207 = vector.extract_strided_slice %204 {offsets = [0, 64], sizes = [8, 32], strides = [1, 1]} : vector<8x128xf32> to vector<8x32xf32>
    %208 = vector.extract_strided_slice %204 {offsets = [0, 96], sizes = [8, 32], strides = [1, 1]} : vector<8x128xf32> to vector<8x32xf32>
    %209 = arith.mulf %206, %192 : vector<8x32xf32>
    %210 = arith.mulf %205, %207 : vector<8x32xf32>
    %211 = arith.addf %209, %210 : vector<8x32xf32>
    %212 = math.tanh %211 : vector<8x32xf32>
    %213 = arith.mulf %208, %212 : vector<8x32xf32>
    %214 = vector.extract_strided_slice %173 {offsets = [16, 0], sizes = [8, 128], strides = [1, 1]} : vector<64x128xf32> to vector<8x128xf32>
    %cst_38 = arith.constant dense<0.000000e+00> : vector<8x128xf32>
    %215 = tpu.matmul %213, %169, %cst_38 {dimension_numbers = #tpu.dot_dimension_numbers<[1], [0], [0], [1], [0, 0, 1, 1], [], []>} : vector<8x32xf32>, vector<32x128xf32>, vector<8x128xf32> -> vector<8x128xf32>
    %216 = arith.addf %214, %215 : vector<8x128xf32>
    %217 = math.tanh %216 : vector<8x128xf32>
    %218 = arith.negf %216 : vector<8x128xf32>
    %219 = math.exp %218 : vector<8x128xf32>
    %cst_39 = arith.constant 1.000000e+00 : f32
    %220 = vector.broadcast %cst_39 : f32 to vector<8x128xf32>
    %221 = arith.addf %220, %219 : vector<8x128xf32>
    %222 = arith.divf %220, %221 : vector<8x128xf32>
    %223 = arith.select %5, %217, %222 : vector<8x128xi1>, vector<8x128xf32>
    %224 = vector.extract_strided_slice %223 {offsets = [0, 0], sizes = [8, 32], strides = [1, 1]} : vector<8x128xf32> to vector<8x32xf32>
    %225 = vector.extract_strided_slice %223 {offsets = [0, 32], sizes = [8, 32], strides = [1, 1]} : vector<8x128xf32> to vector<8x32xf32>
    %226 = vector.extract_strided_slice %223 {offsets = [0, 64], sizes = [8, 32], strides = [1, 1]} : vector<8x128xf32> to vector<8x32xf32>
    %227 = vector.extract_strided_slice %223 {offsets = [0, 96], sizes = [8, 32], strides = [1, 1]} : vector<8x128xf32> to vector<8x32xf32>
    %228 = arith.mulf %225, %211 : vector<8x32xf32>
    %229 = arith.mulf %224, %226 : vector<8x32xf32>
    %230 = arith.addf %228, %229 : vector<8x32xf32>
    %231 = math.tanh %230 : vector<8x32xf32>
    %232 = arith.mulf %227, %231 : vector<8x32xf32>
    %233 = vector.extract_strided_slice %173 {offsets = [24, 0], sizes = [8, 128], strides = [1, 1]} : vector<64x128xf32> to vector<8x128xf32>
    %cst_40 = arith.constant dense<0.000000e+00> : vector<8x128xf32>
    %234 = tpu.matmul %232, %169, %cst_40 {dimension_numbers = #tpu.dot_dimension_numbers<[1], [0], [0], [1], [0, 0, 1, 1], [], []>} : vector<8x32xf32>, vector<32x128xf32>, vector<8x128xf32> -> vector<8x128xf32>
    %235 = arith.addf %233, %234 : vector<8x128xf32>
    %236 = math.tanh %235 : vector<8x128xf32>
    %237 = arith.negf %235 : vector<8x128xf32>
    %238 = math.exp %237 : vector<8x128xf32>
    %cst_41 = arith.constant 1.000000e+00 : f32
    %239 = vector.broadcast %cst_41 : f32 to vector<8x128xf32>
    %240 = arith.addf %239, %238 : vector<8x128xf32>
    %241 = arith.divf %239, %240 : vector<8x128xf32>
    %242 = arith.select %5, %236, %241 : vector<8x128xi1>, vector<8x128xf32>
    %243 = vector.extract_strided_slice %242 {offsets = [0, 0], sizes = [8, 32], strides = [1, 1]} : vector<8x128xf32> to vector<8x32xf32>
    %244 = vector.extract_strided_slice %242 {offsets = [0, 32], sizes = [8, 32], strides = [1, 1]} : vector<8x128xf32> to vector<8x32xf32>
    %245 = vector.extract_strided_slice %242 {offsets = [0, 64], sizes = [8, 32], strides = [1, 1]} : vector<8x128xf32> to vector<8x32xf32>
    %246 = vector.extract_strided_slice %242 {offsets = [0, 96], sizes = [8, 32], strides = [1, 1]} : vector<8x128xf32> to vector<8x32xf32>
    %247 = arith.mulf %244, %230 : vector<8x32xf32>
    %248 = arith.mulf %243, %245 : vector<8x32xf32>
    %249 = arith.addf %247, %248 : vector<8x32xf32>
    %250 = math.tanh %249 : vector<8x32xf32>
    %251 = arith.mulf %246, %250 : vector<8x32xf32>
    %252 = vector.extract_strided_slice %173 {offsets = [32, 0], sizes = [8, 128], strides = [1, 1]} : vector<64x128xf32> to vector<8x128xf32>
    %cst_42 = arith.constant dense<0.000000e+00> : vector<8x128xf32>
    %253 = tpu.matmul %251, %169, %cst_42 {dimension_numbers = #tpu.dot_dimension_numbers<[1], [0], [0], [1], [0, 0, 1, 1], [], []>} : vector<8x32xf32>, vector<32x128xf32>, vector<8x128xf32> -> vector<8x128xf32>
    %254 = arith.addf %252, %253 : vector<8x128xf32>
    %255 = math.tanh %254 : vector<8x128xf32>
    %256 = arith.negf %254 : vector<8x128xf32>
    %257 = math.exp %256 : vector<8x128xf32>
    %cst_43 = arith.constant 1.000000e+00 : f32
    %258 = vector.broadcast %cst_43 : f32 to vector<8x128xf32>
    %259 = arith.addf %258, %257 : vector<8x128xf32>
    %260 = arith.divf %258, %259 : vector<8x128xf32>
    %261 = arith.select %5, %255, %260 : vector<8x128xi1>, vector<8x128xf32>
    %262 = vector.extract_strided_slice %261 {offsets = [0, 0], sizes = [8, 32], strides = [1, 1]} : vector<8x128xf32> to vector<8x32xf32>
    %263 = vector.extract_strided_slice %261 {offsets = [0, 32], sizes = [8, 32], strides = [1, 1]} : vector<8x128xf32> to vector<8x32xf32>
    %264 = vector.extract_strided_slice %261 {offsets = [0, 64], sizes = [8, 32], strides = [1, 1]} : vector<8x128xf32> to vector<8x32xf32>
    %265 = vector.extract_strided_slice %261 {offsets = [0, 96], sizes = [8, 32], strides = [1, 1]} : vector<8x128xf32> to vector<8x32xf32>
    %266 = arith.mulf %263, %249 : vector<8x32xf32>
    %267 = arith.mulf %262, %264 : vector<8x32xf32>
    %268 = arith.addf %266, %267 : vector<8x32xf32>
    %269 = math.tanh %268 : vector<8x32xf32>
    %270 = arith.mulf %265, %269 : vector<8x32xf32>
    %271 = vector.extract_strided_slice %173 {offsets = [40, 0], sizes = [8, 128], strides = [1, 1]} : vector<64x128xf32> to vector<8x128xf32>
    %cst_44 = arith.constant dense<0.000000e+00> : vector<8x128xf32>
    %272 = tpu.matmul %270, %169, %cst_44 {dimension_numbers = #tpu.dot_dimension_numbers<[1], [0], [0], [1], [0, 0, 1, 1], [], []>} : vector<8x32xf32>, vector<32x128xf32>, vector<8x128xf32> -> vector<8x128xf32>
    %273 = arith.addf %271, %272 : vector<8x128xf32>
    %274 = math.tanh %273 : vector<8x128xf32>
    %275 = arith.negf %273 : vector<8x128xf32>
    %276 = math.exp %275 : vector<8x128xf32>
    %cst_45 = arith.constant 1.000000e+00 : f32
    %277 = vector.broadcast %cst_45 : f32 to vector<8x128xf32>
    %278 = arith.addf %277, %276 : vector<8x128xf32>
    %279 = arith.divf %277, %278 : vector<8x128xf32>
    %280 = arith.select %5, %274, %279 : vector<8x128xi1>, vector<8x128xf32>
    %281 = vector.extract_strided_slice %280 {offsets = [0, 0], sizes = [8, 32], strides = [1, 1]} : vector<8x128xf32> to vector<8x32xf32>
    %282 = vector.extract_strided_slice %280 {offsets = [0, 32], sizes = [8, 32], strides = [1, 1]} : vector<8x128xf32> to vector<8x32xf32>
    %283 = vector.extract_strided_slice %280 {offsets = [0, 64], sizes = [8, 32], strides = [1, 1]} : vector<8x128xf32> to vector<8x32xf32>
    %284 = vector.extract_strided_slice %280 {offsets = [0, 96], sizes = [8, 32], strides = [1, 1]} : vector<8x128xf32> to vector<8x32xf32>
    %285 = arith.mulf %282, %268 : vector<8x32xf32>
    %286 = arith.mulf %281, %283 : vector<8x32xf32>
    %287 = arith.addf %285, %286 : vector<8x32xf32>
    %288 = math.tanh %287 : vector<8x32xf32>
    %289 = arith.mulf %284, %288 : vector<8x32xf32>
    %290 = vector.extract_strided_slice %173 {offsets = [48, 0], sizes = [8, 128], strides = [1, 1]} : vector<64x128xf32> to vector<8x128xf32>
    %cst_46 = arith.constant dense<0.000000e+00> : vector<8x128xf32>
    %291 = tpu.matmul %289, %169, %cst_46 {dimension_numbers = #tpu.dot_dimension_numbers<[1], [0], [0], [1], [0, 0, 1, 1], [], []>} : vector<8x32xf32>, vector<32x128xf32>, vector<8x128xf32> -> vector<8x128xf32>
    %292 = arith.addf %290, %291 : vector<8x128xf32>
    %293 = math.tanh %292 : vector<8x128xf32>
    %294 = arith.negf %292 : vector<8x128xf32>
    %295 = math.exp %294 : vector<8x128xf32>
    %cst_47 = arith.constant 1.000000e+00 : f32
    %296 = vector.broadcast %cst_47 : f32 to vector<8x128xf32>
    %297 = arith.addf %296, %295 : vector<8x128xf32>
    %298 = arith.divf %296, %297 : vector<8x128xf32>
    %299 = arith.select %5, %293, %298 : vector<8x128xi1>, vector<8x128xf32>
    %300 = vector.extract_strided_slice %299 {offsets = [0, 0], sizes = [8, 32], strides = [1, 1]} : vector<8x128xf32> to vector<8x32xf32>
    %301 = vector.extract_strided_slice %299 {offsets = [0, 32], sizes = [8, 32], strides = [1, 1]} : vector<8x128xf32> to vector<8x32xf32>
    %302 = vector.extract_strided_slice %299 {offsets = [0, 64], sizes = [8, 32], strides = [1, 1]} : vector<8x128xf32> to vector<8x32xf32>
    %303 = vector.extract_strided_slice %299 {offsets = [0, 96], sizes = [8, 32], strides = [1, 1]} : vector<8x128xf32> to vector<8x32xf32>
    %304 = arith.mulf %301, %287 : vector<8x32xf32>
    %305 = arith.mulf %300, %302 : vector<8x32xf32>
    %306 = arith.addf %304, %305 : vector<8x32xf32>
    %307 = math.tanh %306 : vector<8x32xf32>
    %308 = arith.mulf %303, %307 : vector<8x32xf32>
    %309 = vector.extract_strided_slice %173 {offsets = [56, 0], sizes = [8, 128], strides = [1, 1]} : vector<64x128xf32> to vector<8x128xf32>
    %cst_48 = arith.constant dense<0.000000e+00> : vector<8x128xf32>
    %310 = tpu.matmul %308, %169, %cst_48 {dimension_numbers = #tpu.dot_dimension_numbers<[1], [0], [0], [1], [0, 0, 1, 1], [], []>} : vector<8x32xf32>, vector<32x128xf32>, vector<8x128xf32> -> vector<8x128xf32>
    %311 = arith.addf %309, %310 : vector<8x128xf32>
    %312 = math.tanh %311 : vector<8x128xf32>
    %313 = arith.negf %311 : vector<8x128xf32>
    %314 = math.exp %313 : vector<8x128xf32>
    %cst_49 = arith.constant 1.000000e+00 : f32
    %315 = vector.broadcast %cst_49 : f32 to vector<8x128xf32>
    %316 = arith.addf %315, %314 : vector<8x128xf32>
    %317 = arith.divf %315, %316 : vector<8x128xf32>
    %318 = arith.select %5, %312, %317 : vector<8x128xi1>, vector<8x128xf32>
    %319 = vector.extract_strided_slice %318 {offsets = [0, 0], sizes = [8, 32], strides = [1, 1]} : vector<8x128xf32> to vector<8x32xf32>
    %320 = vector.extract_strided_slice %318 {offsets = [0, 32], sizes = [8, 32], strides = [1, 1]} : vector<8x128xf32> to vector<8x32xf32>
    %321 = vector.extract_strided_slice %318 {offsets = [0, 64], sizes = [8, 32], strides = [1, 1]} : vector<8x128xf32> to vector<8x32xf32>
    %322 = vector.extract_strided_slice %318 {offsets = [0, 96], sizes = [8, 32], strides = [1, 1]} : vector<8x128xf32> to vector<8x32xf32>
    %323 = arith.mulf %320, %306 : vector<8x32xf32>
    %324 = arith.mulf %319, %321 : vector<8x32xf32>
    %325 = arith.addf %323, %324 : vector<8x32xf32>
    %326 = math.tanh %325 : vector<8x32xf32>
    %327 = arith.mulf %322, %326 : vector<8x32xf32>
    %c0_50 = arith.constant 0 : index
    %c0_51 = arith.constant 0 : index
    %328 = vector.load %arg7[%c0_50, %c0_51] : memref<32x128xf32, #tpu.memory_space<vmem>>, vector<32x128xf32>
    %cst_52 = arith.constant dense<0.000000e+00> : vector<8x128xf32>
    %329 = tpu.matmul %327, %328, %cst_52 {dimension_numbers = #tpu.dot_dimension_numbers<[1], [0], [0], [1], [0, 0, 1, 1], [], []>} : vector<8x32xf32>, vector<32x128xf32>, vector<8x128xf32> -> vector<8x128xf32>
    %c0_53 = arith.constant 0 : index
    %c0_54 = arith.constant 0 : index
    %330 = vector.load %arg8[%c0_53, %c0_54] : memref<1x128xf32, #tpu.memory_space<vmem>>, vector<1x128xf32>
    %331 = vector.broadcast %330 : vector<1x128xf32> to vector<8x128xf32>
    %332 = arith.addf %329, %331 : vector<8x128xf32>
    %cst_55 = arith.constant dense<0xFF800000> : vector<8xf32>
    %333 = vector.multi_reduction <maximumf>, %332, %cst_55 [1] : vector<8x128xf32> to vector<8xf32>
    %334 = vector.shape_cast %333 : vector<8xf32> to vector<8x1xf32>
    %335 = vector.broadcast %334 : vector<8x1xf32> to vector<8x128xf32>
    %336 = arith.subf %332, %335 : vector<8x128xf32>
    %337 = math.exp %336 : vector<8x128xf32>
    %cst_56 = arith.constant dense<0.000000e+00> : vector<8xf32>
    %338 = vector.multi_reduction <add>, %337, %cst_56 [1] : vector<8x128xf32> to vector<8xf32>
    %339 = vector.shape_cast %338 : vector<8xf32> to vector<8x1xf32>
    %340 = vector.broadcast %339 : vector<8x1xf32> to vector<8x128xf32>
    %341 = arith.divf %337, %340 : vector<8x128xf32>
    %c0_57 = arith.constant 0 : index
    %c0_58 = arith.constant 0 : index
    %342 = vector.load %arg9[%c0_57, %c0_58] : memref<8x128xf32, #tpu.memory_space<vmem>>, vector<8x128xf32>
    tpu.vector_store %arg9[%c0_57, %c0_58], %341 {strides = array<i32>} : memref<8x128xf32, #tpu.memory_space<vmem>>, vector<8x128xf32>,
    return
  }
}

</mosaic_0001>

<bundles_post_ra>
// kernel: simple_lstm_forward.1
= control target key start
LH: loop header
LB: loop body
LE: loop exit
PB: predicated region body
PF: predicated region fallthrough
CT: control target
= control target key end

     0   :  { %14 = vsyncpa [#allocation3], 0  ;;  %s1493_s12 = smov [#allocation2]   ;;  %s1494_s14 = smov 128   ;;  %s1883_s0 = inlined_call_operand.vmem [shape: f32[64,4], index: 0, kind: input, shape index: {}]   ;;  %s1884_s1 = inlined_call_operand.vmem [shape: f32[4,128], index: 1, kind: input, shape index: {}]   ;;  %s1885_s2 = inlined_call_operand.vmem [shape: f32[32,128], index: 2, kind: input, shape index: {}]   ;;  %s1886_s3 = inlined_call_operand.vmem [shape: f32[1,128], index: 3, kind: input, shape index: {}]   ;;  %s1887_s4 = inlined_call_operand.vmem [shape: f32[32,128], index: 4, kind: input, shape index: {}]   ;;  %s1888_s5 = inlined_call_operand.vmem [shape: f32[32,128], index: 5, kind: input, shape index: {}]   ;;  %s1889_s6 = inlined_call_operand.vmem [shape: f32[1,128], index: 6, kind: input, shape index: {}]   ;;  %s1890_s7 = inlined_call_operand.hbm [shape: f32[32,128], index: 7, kind: input, shape index: {}]   ;;  %s1891_s8 = inlined_call_operand.vmem [shape: f32[1,128], index: 8, kind: input, shape index: {}]   ;;  %s1892_s9 = inlined_call_operand.vmem [shape: f32[8,128], index: 9, kind: output, shape index: {}]  }
   0x1   :  { %s33_s11 = sshll.u32 %s1890_s7, 4  ;;  %s35_s13 = sshll.u32 %s1493_s12, 4  ;;  %s34_s11 = int_to_ptr.hbm [resolvable:$true] %s33_s11  ;;  %s36_s13 = int_to_ptr.vmem [resolvable:$true] %s35_s13 }
   0x2   :  { %s1495_s15 = smov 8  }
   0x3   :  { %41 = dma.hbm_to_vmem [thread:$0]  %s34_s11, 512, %s36_s13, [#allocation3], %s1494_s14, %s1494_s14, %s1495_s15  }
   0x4   :  { %1491 = dma.done.wait [#allocation3], 512  }
   0x5   :  { %1492 = vsyncadd [#allocation3], 4294966784  ;;  %vm95_vm0 = vcmask 1043456   ;;  %vm70_vm1 = vcmask 31744   ;;  %v1555_v0 = vld [vmem:[%s1885_s2 + $0x18] sm:$0xff]  ;;  %v1560_v1 = vld [vmem:[%s1885_s2 + $0x10] sm:$0xff]  ;;  %v48_v15 = vlaneseq }
   0x6   :  { %v61_v2 = vld [vmem:[%s1884_s1] sm:$0xf]  ;;  %156 = vmatpush.msra.mxu1 %v1555_v0  ;;  %v1572_v4 = vld [vmem:[%s1885_s2 + $0x8] sm:$0xff]  ;;  %220 = vmatpush.msra.mxu2 %v1555_v0  ;;  %v1496_v6 = vmov 0.0   ;;  %s1497_s27 = smov 64   ;;  %s1498_s28 = smov 32  }
   0x7   :  { %1277 = vmatpush.msk.msra.mxu0 %vm95_vm0, %v61_v2  ;;  %v53_v3 = vld [vmem:[%s1883_s0] sm:$0xff]  ;;  %v49_v17 = vand.u32 127, %v48_v15  ;;  %v654_v36 = vld [vmem:[%s1887_s4 + $0x18] sm:$0xff]  ;;  %v653_v37 = vld [vmem:[%s1887_s4 + $0x10] sm:$0xff]  ;;  %vm140_vm9 = vcmask 261120  }
   0x8   :  { %1278 = vmatmul.msk.f32.vlgmr.msra.gmra.mxu0 %vm70_vm1, %v53_v3  ;;  %157 = vmatpush.msra.mxu1 %v1560_v1  ;;  %v1581_v5 = vld [vmem:[%s1885_s2] sm:$0xff]  ;;  %v652_v38 = vld [vmem:[%s1887_s4 + $0x8] sm:$0xff] }
   0x9   :  { %476 = vmatpush.msrb.mxu0 %v1555_v0  ;;  %221 = vmatpush.msra.mxu2 %v1560_v1  ;;  %v1607_v7 = vld [vmem:[%s1886_s3] ss:$0 sm:$0xff]  ;;  %vm50_vm2 = vcmp.ge.s32.totalorder %v49_v17, 64  ;;  %vm51_vm3 = vcmp.lt.s32.totalorder %v49_v17, 96  ;;  %v54_v42 = vld [vmem:[%s1883_s0 + $0x8] sm:$0xff] }
   0xa   :  { %158 = vmatpush.msra.mxu1 %v1572_v4  ;;  %vm1610_vm5 = vmand %vm50_vm2, %vm51_vm3  ;;  %680 = vmatpush.msra.mxu3 %v654_v36  ;;  %v651_v39 = vld [vmem:[%s1887_s4] sm:$0xff] }
   0xb   :  { %477 = vmatpush.msrb.mxu0 %v1560_v1  ;;  %222 = vmatpush.msra.mxu2 %v1572_v4  ;;  %v1216_v23 = vld [vmem:[#allocation2] sm:$0xff] }
   0xc   :  { %159 = vmatpush.msra.mxu1 %v1581_v5  ;;  %681 = vmatpush.msra.mxu3 %v653_v37  ;;  %v56_v37 = vld [vmem:[%s1883_s0 + $0x18] sm:$0xff] }
   0xd   :  { %478 = vmatpush.msrb.mxu0 %v1572_v4  ;;  %160 = vmatmul.f32.vlgmr.msra.gmra.mxu1 %v1496_v6 }
   0xe   :  { %223 = vmatpush.msra.mxu2 %v1581_v5  ;;  %348 = vmatpush.msrb.mxu1 %v1555_v0 }
   0xf   :  { %479 = vmatpush.msrb.mxu0 %v1581_v5  ;;  %682 = vmatpush.msra.mxu3 %v652_v38 }
  0x10   :  { %284 = vmatpush.msrb.mxu2 %v1555_v0  ;;  %349 = vmatpush.msrb.mxu1 %v1560_v1 }
  0x11   :  { %683 = vmatpush.msra.mxu3 %v651_v39  ;;  %1279 = vmatmul.msk.f32.gmra.mxu0 %vm70_vm1, %v54_v42 }
  0x12   :  { %285 = vmatpush.msrb.mxu2 %v1560_v1  ;;  %350 = vmatpush.msrb.mxu1 %v1572_v4 }
  0x14   :  { %286 = vmatpush.msrb.mxu2 %v1572_v4  ;;  %351 = vmatpush.msrb.mxu1 %v1581_v5 }
  0x16   :  { %287 = vmatpush.msrb.mxu2 %v1581_v5  ;;  %540 = vmatpush.msra.mxu1 %v1555_v0 }
  0x18   :  { %541 = vmatpush.msra.mxu1 %v1560_v1 }
  0x1a   :  { %542 = vmatpush.msra.mxu1 %v1572_v4 }
  0x1c   :  { %543 = vmatpush.msra.mxu1 %v1581_v5 }
  0x85   :  { %v116_v8 = vpop.f32.mrf.mxu0 }
  0x86   :  { %v117_v9 = vadd.f32 %v1607_v7, %v116_v8 }
  0x8a   :  { %v161_v10 = vpop.f32.mrf.mxu1 }
  0x8b   :  { %v164_v11 = vadd.f32 %v161_v10, %v117_v9 }
  0x8d   :  { %v1286_v12 = vmul.f32 -1.442695, %v164_v11 }
  0x8e   :  { %v119_v44 = vpop.f32.mrf.mxu0 }
  0x8f   :  { %1334 = vpow2.f32 %v1286_v12  ;;  %v120_v45 = vadd.f32 %v1607_v7, %v119_v44 }
  0x95   :  { %v1335_v13 = vpop.eup %1334 }
  0x96   :  { %v169_v14 = vadd.f32 1.0, %v1335_v13  ;;  %v55_v13 = vld [vmem:[%s1883_s0 + $0x10] sm:$0xff] }
  0x97   :  { %1280 = vmatmul.msk.f32.gmra.mxu0 %vm70_vm1, %v55_v13 }
  0x98   :  { %1336 = vrcp.f32 %v169_v14  ;;  %v181_v20 = vand.u32 2147483648, %v169_v14  ;;  %v179_v22 = vand.u32 2147483647, %v169_v14  ;;  %vm175_vm6 = vweird.f32 %v169_v14 }
  0x99   :  { %1338 = vtanh.f32 %v164_v11 }
  0x9a   :  { %v182_v25 = vor.u32 1.1754944e-38, %v181_v20  ;;  %vm180_vm8 = vcmp.eq.f32.partialorder %v179_v22, 8.507059e+37 }
  0x9e   :  { %v1337_v16 = vpop.eup %1336 }
  0x9f   :  { %v171_v18 = vmul.f32 %v1337_v16, %v169_v14  ;;  %vm176_vm4 = vweird.f32 %v1337_v16  ;;  %v1339_v27 = vpop.eup %1338  ;;  %1281 = vmatmul.msk.f32.gmra.mxu0 %vm70_vm1, %v56_v37 }
  0xa0   :  { %vm177_vm7 = vmor %vm175_vm6, %vm176_vm4 }
  0xa1   :  { %v172_v19 = vsub.f32 1.0, %v171_v18 }
  0xa3   :  { %v173_v21 = vmul.f32 %v1337_v16, %v172_v19 }
  0xa5   :  { %v174_v24 = vadd.f32 %v1337_v16, %v173_v21 }
  0xa7   :  { %v178_v26 = vsel %vm177_vm7, %v1337_v16, %v174_v24 }
  0xa8   :  { %v183_v28 = vsel %vm180_vm8, %v182_v25, %v178_v26 }
  0xa9   :  { %v185_v29 = vsel %vm1610_vm5, %v1339_v27, %v183_v28 }
  0xaa   :  { %188 = vrot.lane.b32.xlu0 %v185_v29, %s1497_s27  ;;  %v186_v32 = vmul.f32 0.0, %v185_v29 }
 0x114   :  { %v122_v15 = vpop.f32.mrf.mxu0 }
 0x115   :  { %v123_v16 = vadd.f32 %v1607_v7, %v122_v15 }
 0x11c   :  { %v189_v30 = vpop.permute.xlu0 %188 }
 0x11d   :  { %v191_v31 = vmul.f32 %v189_v30, %v185_v29 }
 0x11f   :  { %193 = vrot.lane.b32.xlu0 %v191_v31, %s1498_s28 }
 0x191   :  { %v194_v33 = vpop.permute.xlu0 %193 }
 0x192   :  { %v196_v34 = vadd.f32 %v194_v33, %v186_v32 }
 0x194   :  { %1340 = vtanh.f32 %v196_v34 }
 0x19a   :  { %v1341_v35 = vpop.eup %1340 }
 0x19b   :  { %199 = vrot.lane.b32.xlu1 %v1341_v35, %s1497_s27 }
 0x20d   :  { %v200_v40 = vpop.permute.xlu1 %199 }
 0x20e   :  { %v202_v41 = vmul.f32 %v200_v40, %v185_v29 }
 0x210   :  { %204 = vrot.lane.b32.xlu1 %v202_v41, %s1498_s28  ;;  %v125_v41 = vpop.f32.mrf.mxu0 }
 0x211   :  { %v126_v42 = vadd.f32 %v1607_v7, %v125_v41 }
 0x282   :  { %v205_v43 = vpop.permute.xlu1 %204 }
 0x283   :  { %1287 = vmatmul.msk.f32.vlgmr.msra.gmra.mxu2 %vm140_vm9, %v205_v43  ;;  %1301 = vmatmul.msk.f32.vlgmr.msra.gmra.mxu3 %vm140_vm9, %v205_v43 }
 0x284   :  { %412 = vmatpush.msra.mxu2 %v1555_v0 }
 0x286   :  { %413 = vmatpush.msra.mxu2 %v1560_v1 }
 0x288   :  { %414 = vmatpush.msra.mxu2 %v1572_v4 }
 0x28a   :  { %415 = vmatpush.msra.mxu2 %v1581_v5 }
 0x306   :  { %v225_v46 = vpop.f32.mrf.mxu2 }
 0x307   :  { %v228_v47 = vadd.f32 %v225_v46, %v120_v45 }
 0x309   :  { %v1288_v48 = vmul.f32 -1.442695, %v228_v47 }
 0x30b   :  { %1342 = vpow2.f32 %v1288_v48 }
 0x311   :  { %v1343_v49 = vpop.eup %1342 }
 0x312   :  { %v233_v50 = vadd.f32 1.0, %v1343_v49 }
 0x314   :  { %1344 = vrcp.f32 %v233_v50  ;;  %v245_v54 = vand.u32 2147483648, %v233_v50  ;;  %v243_v56 = vand.u32 2147483647, %v233_v50  ;;  %vm239_vm11 = vweird.f32 %v233_v50 }
 0x315   :  { %1346 = vtanh.f32 %v228_v47 }
 0x316   :  { %v246_v58 = vor.u32 1.1754944e-38, %v245_v54  ;;  %vm244_vm13 = vcmp.eq.f32.partialorder %v243_v56, 8.507059e+37 }
 0x31a   :  { %v1345_v51 = vpop.eup %1344 }
 0x31b   :  { %v235_v52 = vmul.f32 %v1345_v51, %v233_v50  ;;  %vm240_vm10 = vweird.f32 %v1345_v51  ;;  %v1347_v60 = vpop.eup %1346 }
 0x31c   :  { %vm241_vm12 = vmor %vm239_vm11, %vm240_vm10 }
 0x31d   :  { %v236_v53 = vsub.f32 1.0, %v235_v52 }
 0x31f   :  { %v237_v55 = vmul.f32 %v1345_v51, %v236_v53 }
 0x321   :  { %v238_v57 = vadd.f32 %v1345_v51, %v237_v55 }
 0x323   :  { %v242_v59 = vsel %vm241_vm12, %v1345_v51, %v238_v57 }
 0x324   :  { %v247_v61 = vsel %vm244_vm13, %v246_v58, %v242_v59 }
 0x325   :  { %v249_v62 = vsel %vm1610_vm5, %v1347_v60, %v247_v61 }
 0x326   :  { %252 = vrot.lane.b32.xlu2 %v249_v62, %s1497_s27  ;;  %v250_v3 = vmul.f32 %v249_v62, %v196_v34 }
 0x380   :  { %v253_v63 = vpop.permute.xlu2 %252 }
 0x381   :  { %v255_v2 = vmul.f32 %v253_v63, %v249_v62 }
 0x383   :  { %257 = vrot.lane.b32.xlu2 %v255_v2, %s1498_s28 }
 0x3dd   :  { %v258_v8 = vpop.permute.xlu2 %257 }
 0x3de   :  { %v260_v9 = vadd.f32 %v258_v8, %v250_v3 }
 0x3e0   :  { %1348 = vtanh.f32 %v260_v9 }
 0x3e6   :  { %v1349_v10 = vpop.eup %1348 }
 0x3e7   :  { %263 = vrot.lane.b32.xlu0 %v1349_v10, %s1497_s27  ;;  %v57_v10 = vld [vmem:[%s1883_s0 + $0x20] sm:$0xff] }
 0x3e8   :  { %1282 = vmatmul.msk.f32.gmra.mxu0 %vm70_vm1, %v57_v10 }
 0x459   :  { %v264_v11 = vpop.permute.xlu0 %263 }
 0x45a   :  { %v266_v12 = vmul.f32 %v264_v11, %v249_v62 }
 0x45c   :  { %268 = vrot.lane.b32.xlu1 %v266_v12, %s1498_s28 }
 0x465   :  { %v128_v12 = vpop.f32.mrf.mxu0 }
 0x466   :  { %v129_v13 = vadd.f32 %v1607_v7, %v128_v12  ;;  %v1728_v12 = vld [vmem:[%s1888_s5 + $0x10] sm:$0xff] }
 0x4ce   :  { %v269_v14 = vpop.permute.xlu1 %268 }
 0x4cf   :  { %1289 = vmatmul.msk.f32.vlgmr.msrb.gmra.mxu2 %vm140_vm9, %v269_v14  ;;  %1302 = vmatmul.msk.f32.gmra.mxu3 %vm140_vm9, %v269_v14 }
 0x4d0   :  { %604 = vmatpush.msrb.mxu2 %v1555_v0 }
 0x4d2   :  { %605 = vmatpush.msrb.mxu2 %v1560_v1 }
 0x4d4   :  { %606 = vmatpush.msrb.mxu2 %v1572_v4 }
 0x4d6   :  { %607 = vmatpush.msrb.mxu2 %v1581_v5 }
 0x552   :  { %v289_v17 = vpop.f32.mrf.mxu2 }
 0x553   :  { %v292_v18 = vadd.f32 %v289_v17, %v123_v16 }
 0x555   :  { %v1290_v19 = vmul.f32 -1.442695, %v292_v18 }
 0x557   :  { %1350 = vpow2.f32 %v1290_v19 }
 0x55d   :  { %v1351_v20 = vpop.eup %1350 }
 0x55e   :  { %v297_v21 = vadd.f32 1.0, %v1351_v20 }
 0x560   :  { %1352 = vrcp.f32 %v297_v21  ;;  %v309_v0 = vand.u32 2147483648, %v297_v21  ;;  %v307_v4 = vand.u32 2147483647, %v297_v21  ;;  %vm303_vm15 = vweird.f32 %v297_v21 }
 0x561   :  { %1354 = vtanh.f32 %v292_v18 }
 0x562   :  { %v310_v5 = vor.u32 1.1754944e-38, %v309_v0  ;;  %vm308_vm2 = vcmp.eq.f32.partialorder %v307_v4, 8.507059e+37 }
 0x566   :  { %v1353_v22 = vpop.eup %1352 }
 0x567   :  { %v299_v24 = vmul.f32 %v1353_v22, %v297_v21  ;;  %vm304_vm14 = vweird.f32 %v1353_v22  ;;  %v1355_v28 = vpop.eup %1354 }
 0x568   :  { %vm305_vm0 = vmor %vm303_vm15, %vm304_vm14 }
 0x569   :  { %v300_v25 = vsub.f32 1.0, %v299_v24 }
 0x56b   :  { %v301_v1 = vmul.f32 %v1353_v22, %v300_v25 }
 0x56d   :  { %v302_v26 = vadd.f32 %v1353_v22, %v301_v1 }
 0x56f   :  { %v306_v27 = vsel %vm305_vm0, %v1353_v22, %v302_v26 }
 0x570   :  { %v311_v29 = vsel %vm308_vm2, %v310_v5, %v306_v27 }
 0x571   :  { %v313_v30 = vsel %vm1610_vm5, %v1355_v28, %v311_v29 }
 0x572   :  { %316 = vrot.lane.b32.xlu2 %v313_v30, %s1497_s27  ;;  %v314_v33 = vmul.f32 %v313_v30, %v260_v9 }
 0x5cc   :  { %v317_v31 = vpop.permute.xlu2 %316 }
 0x5cd   :  { %v319_v32 = vmul.f32 %v317_v31, %v313_v30 }
 0x5cf   :  { %321 = vrot.lane.b32.xlu0 %v319_v32, %s1498_s28 }
 0x641   :  { %v322_v34 = vpop.permute.xlu0 %321 }
 0x642   :  { %v324_v35 = vadd.f32 %v322_v34, %v314_v33  ;;  %v58_v34 = vld [vmem:[%s1883_s0 + $0x28] sm:$0xff] }
 0x643   :  { %1283 = vmatmul.msk.f32.gmra.mxu0 %vm70_vm1, %v58_v34 }
 0x644   :  { %1356 = vtanh.f32 %v324_v35 }
 0x64a   :  { %v1357_v36 = vpop.eup %1356 }
 0x64b   :  { %327 = vrot.lane.b32.xlu1 %v1357_v36, %s1497_s27  ;;  %v60_v36 = vld [vmem:[%s1883_s0 + $0x38] sm:$0xff] }
 0x6bd   :  { %v328_v38 = vpop.permute.xlu1 %327 }
 0x6be   :  { %v330_v39 = vmul.f32 %v328_v38, %v313_v30 }
 0x6c0   :  { %332 = vrot.lane.b32.xlu2 %v330_v39, %s1498_s28 }
 0x71a   :  { %v333_v40 = vpop.permute.xlu2 %332 }
 0x71b   :  { %1291 = vmatmul.msk.f32.vlgmr.msrb.gmra.mxu1 %vm140_vm9, %v333_v40  ;;  %1303 = vmatmul.msk.f32.gmra.mxu3 %vm140_vm9, %v333_v40  ;;  %v131_v40 = vpop.f32.mrf.mxu0 }
 0x798   :  { %v353_v43 = vpop.f32.mrf.mxu1 }
 0x799   :  { %v356_v44 = vadd.f32 %v353_v43, %v126_v42  ;;  %v132_v43 = vadd.f32 %v1607_v7, %v131_v40 }
 0x79b   :  { %v1292_v45 = vmul.f32 -1.442695, %v356_v44 }
 0x79d   :  { %1358 = vpow2.f32 %v1292_v45 }
 0x7a3   :  { %v1359_v46 = vpop.eup %1358 }
 0x7a4   :  { %v361_v47 = vadd.f32 1.0, %v1359_v46 }
 0x7a6   :  { %1360 = vrcp.f32 %v361_v47  ;;  %v373_v51 = vand.u32 2147483648, %v361_v47  ;;  %v371_v53 = vand.u32 2147483647, %v361_v47  ;;  %vm367_vm4 = vweird.f32 %v361_v47 }
 0x7a7   :  { %1362 = vtanh.f32 %v356_v44 }
 0x7a8   :  { %v374_v55 = vor.u32 1.1754944e-38, %v373_v51  ;;  %vm372_vm7 = vcmp.eq.f32.partialorder %v371_v53, 8.507059e+37 }
 0x7ac   :  { %v1361_v48 = vpop.eup %1360 }
 0x7ad   :  { %v363_v49 = vmul.f32 %v1361_v48, %v361_v47  ;;  %vm368_vm3 = vweird.f32 %v1361_v48  ;;  %v1363_v57 = vpop.eup %1362 }
 0x7ae   :  { %vm369_vm6 = vmor %vm367_vm4, %vm368_vm3 }
 0x7af   :  { %v364_v50 = vsub.f32 1.0, %v363_v49 }
 0x7b1   :  { %v365_v52 = vmul.f32 %v1361_v48, %v364_v50 }
 0x7b3   :  { %v366_v54 = vadd.f32 %v1361_v48, %v365_v52 }
 0x7b5   :  { %v370_v56 = vsel %vm369_vm6, %v1361_v48, %v366_v54 }
 0x7b6   :  { %v375_v58 = vsel %vm372_vm7, %v374_v55, %v370_v56 }
 0x7b7   :  { %v377_v59 = vsel %vm1610_vm5, %v1363_v57, %v375_v58 }
 0x7b8   :  { %380 = vrot.lane.b32.xlu0 %v377_v59, %s1497_s27  ;;  %v378_v62 = vmul.f32 %v377_v59, %v324_v35  ;;  %v59_v35 = vld [vmem:[%s1883_s0 + $0x30] sm:$0xff] }
 0x7b9   :  { %1284 = vmatmul.msk.f32.gmra.mxu0 %vm70_vm1, %v59_v35 }
 0x7c1   :  { %1285 = vmatmul.msk.f32.gmra.mxu0 %vm70_vm1, %v60_v36 }
 0x82a   :  { %v381_v60 = vpop.permute.xlu0 %380 }
 0x82b   :  { %v383_v61 = vmul.f32 %v381_v60, %v377_v59 }
 0x82d   :  { %385 = vrot.lane.b32.xlu1 %v383_v61, %s1498_s28 }
 0x836   :  { %v1706_v41 = vpop.f32.mrf.mxu0 }
 0x83e   :  { %v1708_v42 = vpop.f32.mrf.mxu0 }
 0x89f   :  { %v386_v63 = vpop.permute.xlu1 %385 }
 0x8a0   :  { %v388_v2 = vadd.f32 %v386_v63, %v378_v62 }
 0x8a2   :  { %1364 = vtanh.f32 %v388_v2 }
 0x8a8   :  { %v1365_v3 = vpop.eup %1364 }
 0x8a9   :  { %391 = vrot.lane.b32.xlu2 %v1365_v3, %s1497_s27 }
 0x903   :  { %v392_v8 = vpop.permute.xlu2 %391 }
 0x904   :  { %v394_v9 = vmul.f32 %v392_v8, %v377_v59 }
 0x906   :  { %396 = vrot.lane.b32.xlu0 %v394_v9, %s1498_s28 }
 0x978   :  { %v397_v11 = vpop.permute.xlu0 %396 }
 0x979   :  { %1293 = vmatmul.msk.f32.vlgmr.msra.gmra.mxu2 %vm140_vm9, %v397_v11  ;;  %1304 = vmatmul.msk.f32.gmra.mxu3 %vm140_vm9, %v397_v11  ;;  %v1723_v11 = vld [vmem:[%s1888_s5 + $0x18] sm:$0xff] }
 0x97a   :  { %721 = vmatpush.msrb.mxu1 %v1723_v11  ;;  %785 = vmatpush.msra.mxu2 %v1723_v11 }
 0x97c   :  { %722 = vmatpush.msrb.mxu1 %v1728_v12  ;;  %786 = vmatpush.msra.mxu2 %v1728_v12 }
 0x9fc   :  { %v417_v14 = vpop.f32.mrf.mxu2 }
 0x9fd   :  { %v420_v15 = vadd.f32 %v417_v14, %v129_v13  ;;  %v1735_v13 = vld [vmem:[%s1888_s5 + $0x8] sm:$0xff]  ;;  %v1742_v14 = vld [vmem:[%s1888_s5] sm:$0xff] }
 0x9fe   :  { %723 = vmatpush.msrb.mxu1 %v1735_v13  ;;  %787 = vmatpush.msra.mxu2 %v1735_v13 }
 0x9ff   :  { %v1294_v16 = vmul.f32 -1.442695, %v420_v15 }
 0xa00   :  { %724 = vmatpush.msrb.mxu1 %v1742_v14  ;;  %788 = vmatpush.msra.mxu2 %v1742_v14 }
 0xa01   :  { %1366 = vpow2.f32 %v1294_v16  ;;  %v135_v16 = vadd.f32 %v1607_v7, %v1706_v41 }
 0xa07   :  { %v1367_v17 = vpop.eup %1366 }
 0xa08   :  { %v425_v18 = vadd.f32 1.0, %v1367_v17 }
 0xa0a   :  { %1368 = vrcp.f32 %v425_v18  ;;  %v437_v22 = vand.u32 2147483648, %v425_v18  ;;  %v435_v25 = vand.u32 2147483647, %v425_v18  ;;  %vm431_vm10 = vweird.f32 %v425_v18 }
 0xa0b   :  { %1370 = vtanh.f32 %v420_v15 }
 0xa0c   :  { %v438_v1 = vor.u32 1.1754944e-38, %v437_v22  ;;  %vm436_vm12 = vcmp.eq.f32.partialorder %v435_v25, 8.507059e+37 }
 0xa10   :  { %v1369_v19 = vpop.eup %1368 }
 0xa11   :  { %v427_v20 = vmul.f32 %v1369_v19, %v425_v18  ;;  %vm432_vm8 = vweird.f32 %v1369_v19  ;;  %v1371_v26 = vpop.eup %1370 }
 0xa12   :  { %vm433_vm11 = vmor %vm431_vm10, %vm432_vm8 }
 0xa13   :  { %v428_v21 = vsub.f32 1.0, %v427_v20 }
 0xa15   :  { %v429_v24 = vmul.f32 %v1369_v19, %v428_v21 }
 0xa17   :  { %v430_v0 = vadd.f32 %v1369_v19, %v429_v24 }
 0xa19   :  { %v434_v4 = vsel %vm433_vm11, %v1369_v19, %v430_v0  ;;  %v1764_v19 = vld [vmem:[%s1889_s6] ss:$0 sm:$0xff] }
 0xa1a   :  { %v439_v5 = vsel %vm436_vm12, %v438_v1, %v434_v4 }
 0xa1b   :  { %v441_v27 = vsel %vm1610_vm5, %v1371_v26, %v439_v5 }
 0xa1c   :  { %444 = vrot.lane.b32.xlu1 %v441_v27, %s1497_s27  ;;  %v442_v30 = vmul.f32 %v441_v27, %v388_v2 }
 0xa8e   :  { %v445_v28 = vpop.permute.xlu1 %444 }
 0xa8f   :  { %v447_v29 = vmul.f32 %v445_v28, %v441_v27 }
 0xa91   :  { %449 = vrot.lane.b32.xlu2 %v447_v29, %s1498_s28 }
 0xaeb   :  { %v450_v31 = vpop.permute.xlu2 %449 }
 0xaec   :  { %v452_v32 = vadd.f32 %v450_v31, %v442_v30 }
 0xaee   :  { %1372 = vtanh.f32 %v452_v32 }
 0xaf4   :  { %v1373_v33 = vpop.eup %1372 }
 0xaf5   :  { %455 = vrot.lane.b32.xlu0 %v1373_v33, %s1497_s27 }
 0xb67   :  { %v456_v37 = vpop.permute.xlu0 %455 }
 0xb68   :  { %v458_v38 = vmul.f32 %v456_v37, %v441_v27 }
 0xb6a   :  { %460 = vrot.lane.b32.xlu1 %v458_v38, %s1498_s28 }
 0xbdc   :  { %v461_v39 = vpop.permute.xlu1 %460 }
 0xbdd   :  { %1295 = vmatmul.msk.f32.vlgmr.msrb.gmra.mxu0 %vm140_vm9, %v461_v39  ;;  %1305 = vmatmul.msk.f32.gmra.mxu3 %vm140_vm9, %v461_v39 }
 0xc5a   :  { %v481_v44 = vpop.f32.mrf.mxu0 }
 0xc5b   :  { %v484_v45 = vadd.f32 %v481_v44, %v132_v43 }
 0xc5d   :  { %v1296_v46 = vmul.f32 -1.442695, %v484_v45 }
 0xc5f   :  { %1374 = vpow2.f32 %v1296_v46 }
 0xc65   :  { %v1375_v47 = vpop.eup %1374 }
 0xc66   :  { %v489_v48 = vadd.f32 1.0, %v1375_v47 }
 0xc68   :  { %1376 = vrcp.f32 %v489_v48  ;;  %v501_v52 = vand.u32 2147483648, %v489_v48  ;;  %v499_v54 = vand.u32 2147483647, %v489_v48  ;;  %vm495_vm13 = vweird.f32 %v489_v48 }
 0xc69   :  { %1378 = vtanh.f32 %v484_v45 }
 0xc6a   :  { %v502_v56 = vor.u32 1.1754944e-38, %v501_v52  ;;  %vm500_vm15 = vcmp.eq.f32.partialorder %v499_v54, 8.507059e+37 }
 0xc6e   :  { %v1377_v49 = vpop.eup %1376 }
 0xc6f   :  { %v491_v50 = vmul.f32 %v1377_v49, %v489_v48  ;;  %vm496_vm1 = vweird.f32 %v1377_v49  ;;  %v1379_v58 = vpop.eup %1378 }
 0xc70   :  { %vm497_vm14 = vmor %vm495_vm13, %vm496_vm1 }
 0xc71   :  { %v492_v51 = vsub.f32 1.0, %v491_v50 }
 0xc73   :  { %v493_v53 = vmul.f32 %v1377_v49, %v492_v51 }
 0xc75   :  { %v494_v55 = vadd.f32 %v1377_v49, %v493_v53 }
 0xc77   :  { %v498_v57 = vsel %vm497_vm14, %v1377_v49, %v494_v55 }
 0xc78   :  { %v503_v59 = vsel %vm500_vm15, %v502_v56, %v498_v57 }
 0xc79   :  { %v505_v60 = vsel %vm1610_vm5, %v1379_v58, %v503_v59 }
 0xc7a   :  { %508 = vrot.lane.b32.xlu2 %v505_v60, %s1497_s27  ;;  %v506_v63 = vmul.f32 %v505_v60, %v452_v32 }
 0xcd4   :  { %v509_v61 = vpop.permute.xlu2 %508 }
 0xcd5   :  { %v511_v62 = vmul.f32 %v509_v61, %v505_v60 }
 0xcd7   :  { %513 = vrot.lane.b32.xlu0 %v511_v62, %s1498_s28 }
 0xd49   :  { %v514_v2 = vpop.permute.xlu0 %513 }
 0xd4a   :  { %v1715_v3 = vadd.f32 %v514_v2, %v506_v63 }
 0xd4c   :  { %1380 = vtanh.f32 %v1715_v3 }
 0xd52   :  { %v1381_v8 = vpop.eup %1380 }
 0xd53   :  { %519 = vrot.lane.b32.xlu1 %v1381_v8, %s1497_s27 }
 0xdc5   :  { %v520_v9 = vpop.permute.xlu1 %519 }
 0xdc6   :  { %v522_v10 = vmul.f32 %v520_v9, %v505_v60 }
 0xdc8   :  { %524 = vrot.lane.b32.xlu2 %v522_v10, %s1498_s28 }
 0xe22   :  { %v525_v15 = vpop.permute.xlu2 %524 }
 0xe23   :  { %1297 = vmatmul.msk.f32.vlgmr.msra.gmra.mxu1 %vm140_vm9, %v525_v15  ;;  %1306 = vmatmul.msk.f32.gmra.mxu3 %vm140_vm9, %v525_v15 }
 0xe24   :  { %849 = vmatpush.msra.mxu1 %v1723_v11 }
 0xe26   :  { %850 = vmatpush.msra.mxu1 %v1728_v12 }
 0xe28   :  { %851 = vmatpush.msra.mxu1 %v1735_v13 }
 0xe2a   :  { %852 = vmatpush.msra.mxu1 %v1742_v14 }
 0xe2b   :  { %725 = vmatmul.f32.vlgmr.msrb.gmra.mxu1 %v1496_v6  ;;  %v685_v6 = vpop.f32.mrf.mxu3 }
 0xe2c   :  { %977 = vmatpush.msrb.mxu1 %v1723_v11  ;;  %v686_v21 = vadd.f32 %v1764_v19, %v685_v6 }
 0xe2e   :  { %978 = vmatpush.msrb.mxu1 %v1728_v12 }
 0xe30   :  { %979 = vmatpush.msrb.mxu1 %v1735_v13 }
 0xe32   :  { %980 = vmatpush.msrb.mxu1 %v1742_v14 }
 0xe33   :  { %v688_v15 = vpop.f32.mrf.mxu3 }
 0xea0   :  { %v545_v17 = vpop.f32.mrf.mxu1 }
 0xea1   :  { %v548_v18 = vadd.f32 %v545_v17, %v135_v16  ;;  %v689_v16 = vadd.f32 %v1764_v19, %v688_v15 }
 0xea3   :  { %v1298_v20 = vmul.f32 -1.442695, %v548_v18 }
 0xea5   :  { %1382 = vpow2.f32 %v1298_v20 }
 0xea8   :  { %v726_v22 = vpop.f32.mrf.mxu1 }
 0xea9   :  { %v729_v24 = vadd.f32 %v726_v22, %v686_v21 }
 0xeab   :  { %v1383_v25 = vpop.eup %1382  ;;  %v1309_v0 = vmul.f32 -1.442695, %v729_v24 }
 0xeac   :  { %v553_v1 = vadd.f32 1.0, %v1383_v25 }
 0xead   :  { %1384 = vpow2.f32 %v1309_v0 }
 0xeae   :  { %1386 = vrcp.f32 %v553_v1  ;;  %v565_v28 = vand.u32 2147483648, %v553_v1  ;;  %v563_v30 = vand.u32 2147483647, %v553_v1  ;;  %vm559_vm2 = vweird.f32 %v553_v1 }
 0xeb0   :  { %v566_v33 = vor.u32 1.1754944e-38, %v565_v28  ;;  %vm564_vm4 = vcmp.eq.f32.partialorder %v563_v30, 8.507059e+37 }
 0xeb3   :  { %v1385_v7 = vpop.eup %1384 }
 0xeb4   :  { %v1387_v4 = vpop.eup %1386  ;;  %v734_v26 = vadd.f32 1.0, %v1385_v7 }
 0xeb5   :  { %v555_v5 = vmul.f32 %v1387_v4, %v553_v1  ;;  %vm560_vm0 = vweird.f32 %v1387_v4 }
 0xeb6   :  { %1388 = vrcp.f32 %v734_v26  ;;  %vm561_vm3 = vmor %vm559_vm2, %vm560_vm0  ;;  %v746_v40 = vand.u32 2147483648, %v734_v26  ;;  %v744_v43 = vand.u32 2147483647, %v734_v26  ;;  %vm740_vm7 = vweird.f32 %v734_v26 }
 0xeb7   :  { %v556_v27 = vsub.f32 1.0, %v555_v5  ;;  %1390 = vtanh.f32 %v548_v18 }
 0xeb8   :  { %1392 = vtanh.f32 %v729_v24  ;;  %v747_v45 = vor.u32 1.1754944e-38, %v746_v40  ;;  %vm745_vm10 = vcmp.eq.f32.partialorder %v744_v43, 8.507059e+37 }
 0xeb9   :  { %v557_v29 = vmul.f32 %v1387_v4, %v556_v27 }
 0xebb   :  { %v558_v31 = vadd.f32 %v1387_v4, %v557_v29 }
 0xebc   :  { %v1389_v32 = vpop.eup %1388 }
 0xebd   :  { %v562_v34 = vsel %vm561_vm3, %v1387_v4, %v558_v31  ;;  %v736_v35 = vmul.f32 %v1389_v32, %v734_v26  ;;  %v1391_v36 = vpop.eup %1390  ;;  %vm741_vm6 = vweird.f32 %v1389_v32 }
 0xebe   :  { %v567_v37 = vsel %vm564_vm4, %v566_v33, %v562_v34  ;;  %vm742_vm8 = vmor %vm740_vm7, %vm741_vm6  ;;  %v1393_v47 = vpop.eup %1392 }
 0xebf   :  { %v569_v38 = vsel %vm1610_vm5, %v1391_v36, %v567_v37  ;;  %v737_v39 = vsub.f32 1.0, %v736_v35 }
 0xec0   :  { %572 = vrot.lane.b32.xlu0 %v569_v38, %s1497_s27  ;;  %v570_v54 = vmul.f32 %v569_v38, %v1715_v3 }
 0xec1   :  { %v738_v41 = vmul.f32 %v1389_v32, %v737_v39  ;;  %v691_v39 = vpop.f32.mrf.mxu3 }
 0xec2   :  { %v692_v40 = vadd.f32 %v1764_v19, %v691_v39 }
 0xec3   :  { %v739_v44 = vadd.f32 %v1389_v32, %v738_v41 }
 0xec5   :  { %v743_v46 = vsel %vm742_vm8, %v1389_v32, %v739_v44 }
 0xec6   :  { %v748_v48 = vsel %vm745_vm10, %v747_v45, %v743_v46 }
 0xec7   :  { %v750_v49 = vsel %vm1610_vm5, %v1393_v47, %v748_v48 }
 0xec8   :  { %753 = vrot.lane.b32.xlu1 %v750_v49, %s1497_s27  ;;  %v751_v58 = vmul.f32 0.0, %v750_v49 }
 0xf32   :  { %v573_v50 = vpop.permute.xlu0 %572 }
 0xf33   :  { %v575_v51 = vmul.f32 %v573_v50, %v569_v38 }
 0xf35   :  { %577 = vrot.lane.b32.xlu2 %v575_v51, %s1498_s28 }
 0xf3a   :  { %v754_v52 = vpop.permute.xlu1 %753 }
 0xf3b   :  { %v756_v53 = vmul.f32 %v754_v52, %v750_v49 }
 0xf3d   :  { %758 = vrot.lane.b32.xlu0 %v756_v53, %s1498_s28 }
 0xf8f   :  { %v578_v55 = vpop.permute.xlu2 %577 }
 0xf90   :  { %v1776_v56 = vadd.f32 %v578_v55, %v570_v54 }
 0xf92   :  { %1394 = vtanh.f32 %v1776_v56 }
 0xf98   :  { %v1395_v57 = vpop.eup %1394 }
 0xf99   :  { %583 = vrot.lane.b32.xlu1 %v1395_v57, %s1497_s27 }
 0xfaf   :  { %v759_v59 = vpop.permute.xlu0 %758 }
 0xfb0   :  { %v761_v60 = vadd.f32 %v759_v59, %v751_v58 }
 0xfb2   :  { %1396 = vtanh.f32 %v761_v60 }
 0xfb8   :  { %v1397_v61 = vpop.eup %1396 }
 0xfb9   :  { %764 = vrot.lane.b32.xlu2 %v1397_v61, %s1497_s27 }
0x100b   :  { %v584_v62 = vpop.permute.xlu1 %583 }
0x100c   :  { %v586_v63 = vmul.f32 %v584_v62, %v569_v38 }
0x100e   :  { %588 = vrot.lane.b32.xlu0 %v586_v63, %s1498_s28 }
0x1013   :  { %v765_v2 = vpop.permute.xlu2 %764 }
0x1014   :  { %v767_v3 = vmul.f32 %v765_v2, %v750_v49 }
0x1016   :  { %769 = vrot.lane.b32.xlu1 %v767_v3, %s1498_s28 }
0x1080   :  { %v589_v8 = vpop.permute.xlu0 %588 }
0x1081   :  { %1299 = vmatmul.msk.f32.vlgmr.msrb.gmra.mxu2 %vm140_vm9, %v589_v8  ;;  %1307 = vmatmul.msk.f32.gmra.mxu3 %vm140_vm9, %v589_v8 }
0x1082   :  { %913 = vmatpush.msrb.mxu2 %v1723_v11 }
0x1084   :  { %914 = vmatpush.msrb.mxu2 %v1728_v12 }
0x1086   :  { %915 = vmatpush.msrb.mxu2 %v1735_v13 }
0x1088   :  { %v770_v9 = vpop.permute.xlu1 %769  ;;  %916 = vmatpush.msrb.mxu2 %v1742_v14 }
0x1089   :  { %1310 = vmatmul.msk.f32.vlgmr.msra.gmra.mxu2 %vm140_vm9, %v770_v9 }
0x108a   :  { %1041 = vmatpush.msra.mxu2 %v1723_v11 }
0x108c   :  { %1042 = vmatpush.msra.mxu2 %v1728_v12 }
0x108e   :  { %1043 = vmatpush.msra.mxu2 %v1735_v13 }
0x1090   :  { %1044 = vmatpush.msra.mxu2 %v1742_v14 }
0x1104   :  { %v1794_v10 = vpop.f32.mrf.mxu2 }
0x110c   :  { %v790_v17 = vpop.f32.mrf.mxu2 }
0x110d   :  { %v793_v18 = vadd.f32 %v790_v17, %v689_v16  ;;  %v694_v16 = vpop.f32.mrf.mxu3 }
0x110e   :  { %v695_v17 = vadd.f32 %v1764_v19, %v694_v16 }
0x110f   :  { %v1311_v20 = vmul.f32 -1.442695, %v793_v18 }
0x1111   :  { %1398 = vpow2.f32 %v1311_v20 }
0x1117   :  { %v1399_v6 = vpop.eup %1398 }
0x1118   :  { %v798_v21 = vadd.f32 1.0, %v1399_v6 }
0x111a   :  { %1400 = vrcp.f32 %v798_v21  ;;  %v810_v0 = vand.u32 2147483648, %v798_v21  ;;  %v808_v7 = vand.u32 2147483647, %v798_v21  ;;  %vm804_vm12 = vweird.f32 %v798_v21 }
0x111b   :  { %1402 = vtanh.f32 %v793_v18 }
0x111c   :  { %v811_v26 = vor.u32 1.1754944e-38, %v810_v0  ;;  %vm809_vm13 = vcmp.eq.f32.partialorder %v808_v7, 8.507059e+37 }
0x1120   :  { %v1401_v22 = vpop.eup %1400 }
0x1121   :  { %v800_v24 = vmul.f32 %v1401_v22, %v798_v21  ;;  %vm805_vm11 = vweird.f32 %v1401_v22  ;;  %v1403_v27 = vpop.eup %1402 }
0x1122   :  { %vm806_vm1 = vmor %vm804_vm12, %vm805_vm11 }
0x1123   :  { %v801_v25 = vsub.f32 1.0, %v800_v24 }
0x1125   :  { %v802_v1 = vmul.f32 %v1401_v22, %v801_v25 }
0x1127   :  { %v803_v4 = vadd.f32 %v1401_v22, %v802_v1 }
0x1129   :  { %v807_v5 = vsel %vm806_vm1, %v1401_v22, %v803_v4 }
0x112a   :  { %v812_v28 = vsel %vm809_vm13, %v811_v26, %v807_v5 }
0x112b   :  { %v814_v29 = vsel %vm1610_vm5, %v1403_v27, %v812_v28 }
0x112c   :  { %817 = vrot.lane.b32.xlu2 %v814_v29, %s1497_s27  ;;  %v815_v32 = vmul.f32 %v814_v29, %v761_v60 }
0x1186   :  { %v818_v30 = vpop.permute.xlu2 %817 }
0x1187   :  { %v820_v31 = vmul.f32 %v818_v30, %v814_v29 }
0x1189   :  { %822 = vrot.lane.b32.xlu0 %v820_v31, %s1498_s28 }
0x11fb   :  { %v823_v33 = vpop.permute.xlu0 %822 }
0x11fc   :  { %v825_v34 = vadd.f32 %v823_v33, %v815_v32 }
0x11fe   :  { %1404 = vtanh.f32 %v825_v34 }
0x1204   :  { %v1405_v35 = vpop.eup %1404 }
0x1205   :  { %828 = vrot.lane.b32.xlu1 %v1405_v35, %s1497_s27 }
0x1277   :  { %v829_v36 = vpop.permute.xlu1 %828 }
0x1278   :  { %v831_v37 = vmul.f32 %v829_v36, %v814_v29  ;;  %v697_v36 = vpop.f32.mrf.mxu3 }
0x127a   :  { %833 = vrot.lane.b32.xlu2 %v831_v37, %s1498_s28  ;;  %v698_v37 = vadd.f32 %v1764_v19, %v697_v36 }
0x12d4   :  { %v834_v38 = vpop.permute.xlu2 %833 }
0x12d5   :  { %1312 = vmatmul.msk.f32.vlgmr.msra.gmra.mxu1 %vm140_vm9, %v834_v38 }
0x12d6   :  { %1105 = vmatpush.msra.mxu1 %v1723_v11 }
0x12d8   :  { %1106 = vmatpush.msra.mxu1 %v1728_v12 }
0x12da   :  { %1107 = vmatpush.msra.mxu1 %v1735_v13 }
0x12dc   :  { %1108 = vmatpush.msra.mxu1 %v1742_v14 }
0x1352   :  { %v854_v41 = vpop.f32.mrf.mxu1 }
0x1353   :  { %v857_v43 = vadd.f32 %v854_v41, %v692_v40 }
0x1355   :  { %v1313_v44 = vmul.f32 -1.442695, %v857_v43 }
0x1357   :  { %1406 = vpow2.f32 %v1313_v44 }
0x135d   :  { %v1407_v45 = vpop.eup %1406 }
0x135e   :  { %v862_v46 = vadd.f32 1.0, %v1407_v45 }
0x1360   :  { %1408 = vrcp.f32 %v862_v46  ;;  %v874_v50 = vand.u32 2147483648, %v862_v46  ;;  %v872_v52 = vand.u32 2147483647, %v862_v46  ;;  %vm868_vm15 = vweird.f32 %v862_v46 }
0x1361   :  { %1410 = vtanh.f32 %v857_v43 }
0x1362   :  { %v875_v54 = vor.u32 1.1754944e-38, %v874_v50  ;;  %vm873_vm2 = vcmp.eq.f32.partialorder %v872_v52, 8.507059e+37 }
0x1366   :  { %v1409_v47 = vpop.eup %1408 }
0x1367   :  { %v864_v48 = vmul.f32 %v1409_v47, %v862_v46  ;;  %vm869_vm14 = vweird.f32 %v1409_v47  ;;  %v1411_v57 = vpop.eup %1410 }
0x1368   :  { %vm870_vm0 = vmor %vm868_vm15, %vm869_vm14 }
0x1369   :  { %v865_v49 = vsub.f32 1.0, %v864_v48 }
0x136b   :  { %v866_v51 = vmul.f32 %v1409_v47, %v865_v49 }
0x136d   :  { %v867_v53 = vadd.f32 %v1409_v47, %v866_v51 }
0x136f   :  { %v871_v55 = vsel %vm870_vm0, %v1409_v47, %v867_v53 }
0x1370   :  { %v876_v58 = vsel %vm873_vm2, %v875_v54, %v871_v55 }
0x1371   :  { %v878_v59 = vsel %vm1610_vm5, %v1411_v57, %v876_v58 }
0x1372   :  { %881 = vrot.lane.b32.xlu0 %v878_v59, %s1497_s27  ;;  %v879_v62 = vmul.f32 %v878_v59, %v825_v34 }
0x13e4   :  { %v882_v60 = vpop.permute.xlu0 %881 }
0x13e5   :  { %v884_v61 = vmul.f32 %v882_v60, %v878_v59 }
0x13e7   :  { %886 = vrot.lane.b32.xlu1 %v884_v61, %s1498_s28 }
0x1459   :  { %v887_v63 = vpop.permute.xlu1 %886 }
0x145a   :  { %v889_v2 = vadd.f32 %v887_v63, %v879_v62 }
0x145c   :  { %1412 = vtanh.f32 %v889_v2 }
0x1462   :  { %v1413_v3 = vpop.eup %1412 }
0x1463   :  { %892 = vrot.lane.b32.xlu2 %v1413_v3, %s1497_s27 }
0x14bd   :  { %v893_v8 = vpop.permute.xlu2 %892 }
0x14be   :  { %v895_v9 = vmul.f32 %v893_v8, %v878_v59  ;;  %v700_v8 = vpop.f32.mrf.mxu3 }
0x14c0   :  { %897 = vrot.lane.b32.xlu0 %v895_v9, %s1498_s28  ;;  %v701_v9 = vadd.f32 %v1764_v19, %v700_v8 }
0x1532   :  { %v898_v15 = vpop.permute.xlu0 %897 }
0x1533   :  { %1314 = vmatmul.msk.f32.vlgmr.msrb.gmra.mxu2 %vm140_vm9, %v898_v15 }
0x1534   :  { %1169 = vmatpush.msrb.mxu2 %v1723_v11 }
0x1536   :  { %1170 = vmatpush.msrb.mxu2 %v1728_v12 }
0x1538   :  { %1171 = vmatpush.msrb.mxu2 %v1735_v13 }
0x153a   :  { %1172 = vmatpush.msrb.mxu2 %v1742_v14 }
0x15b6   :  { %v918_v18 = vpop.f32.mrf.mxu2 }
0x15b7   :  { %v921_v20 = vadd.f32 %v918_v18, %v695_v17 }
0x15b9   :  { %v1315_v6 = vmul.f32 -1.442695, %v921_v20 }
0x15bb   :  { %1414 = vpow2.f32 %v1315_v6 }
0x15c1   :  { %v1415_v21 = vpop.eup %1414 }
0x15c2   :  { %v926_v22 = vadd.f32 1.0, %v1415_v21 }
0x15c4   :  { %1416 = vrcp.f32 %v926_v22  ;;  %v938_v11 = vand.u32 2147483648, %v926_v22  ;;  %v936_v13 = vand.u32 2147483647, %v926_v22  ;;  %vm932_vm4 = vweird.f32 %v926_v22 }
0x15c5   :  { %1418 = vtanh.f32 %v921_v20 }
0x15c6   :  { %v939_v14 = vor.u32 1.1754944e-38, %v938_v11  ;;  %vm937_vm7 = vcmp.eq.f32.partialorder %v936_v13, 8.507059e+37 }
0x15ca   :  { %v1417_v24 = vpop.eup %1416 }
0x15cb   :  { %v928_v25 = vmul.f32 %v1417_v24, %v926_v22  ;;  %vm933_vm3 = vweird.f32 %v1417_v24  ;;  %v1419_v4 = vpop.eup %1418 }
0x15cc   :  { %vm934_vm6 = vmor %vm932_vm4, %vm933_vm3 }
0x15cd   :  { %v929_v0 = vsub.f32 1.0, %v928_v25 }
0x15cf   :  { %v930_v12 = vmul.f32 %v1417_v24, %v929_v0 }
0x15d1   :  { %v931_v1 = vadd.f32 %v1417_v24, %v930_v12 }
0x15d3   :  { %v935_v7 = vsel %vm934_vm6, %v1417_v24, %v931_v1 }
0x15d4   :  { %v940_v26 = vsel %vm937_vm7, %v939_v14, %v935_v7 }
0x15d5   :  { %v942_v5 = vsel %vm1610_vm5, %v1419_v4, %v940_v26  ;;  %v1466_v4 = vld [vmem:[%s1886_s3] ss:$0 sm:$0xff] }
0x15d6   :  { %945 = vrot.lane.b32.xlu1 %v942_v5, %s1497_s27  ;;  %v943_v29 = vmul.f32 %v942_v5, %v889_v2  ;;  %v138_v26 = vadd.f32 %v1466_v4, %v1708_v42 }
0x1648   :  { %v946_v27 = vpop.permute.xlu1 %945 }
0x1649   :  { %v948_v28 = vmul.f32 %v946_v27, %v942_v5 }
0x164b   :  { %950 = vrot.lane.b32.xlu2 %v948_v28, %s1498_s28 }
0x16a5   :  { %v951_v30 = vpop.permute.xlu2 %950 }
0x16a6   :  { %v953_v31 = vadd.f32 %v951_v30, %v943_v29 }
0x16a8   :  { %1420 = vtanh.f32 %v953_v31 }
0x16ae   :  { %v1421_v32 = vpop.eup %1420 }
0x16af   :  { %956 = vrot.lane.b32.xlu0 %v1421_v32, %s1497_s27 }
0x1721   :  { %v957_v33 = vpop.permute.xlu0 %956 }
0x1722   :  { %v959_v34 = vmul.f32 %v957_v33, %v942_v5  ;;  %v612_v5 = vadd.f32 %v1794_v10, %v138_v26 }
0x1724   :  { %961 = vrot.lane.b32.xlu1 %v959_v34, %s1498_s28  ;;  %v1300_v27 = vmul.f32 -1.442695, %v612_v5 }
0x1796   :  { %v962_v35 = vpop.permute.xlu1 %961 }
0x1797   :  { %1316 = vmatmul.msk.f32.vlgmr.msrb.gmra.mxu1 %vm140_vm9, %v962_v35 }
0x1814   :  { %v982_v38 = vpop.f32.mrf.mxu1 }
0x1815   :  { %v985_v39 = vadd.f32 %v982_v38, %v698_v37 }
0x1817   :  { %v1317_v40 = vmul.f32 -1.442695, %v985_v39 }
0x1819   :  { %1422 = vpow2.f32 %v1317_v40 }
0x181f   :  { %v1423_v41 = vpop.eup %1422 }
0x1820   :  { %v990_v43 = vadd.f32 1.0, %v1423_v41 }
0x1822   :  { %1424 = vrcp.f32 %v990_v43  ;;  %v1002_v47 = vand.u32 2147483648, %v990_v43  ;;  %v1000_v49 = vand.u32 2147483647, %v990_v43  ;;  %vm996_vm10 = vweird.f32 %v990_v43 }
0x1823   :  { %1426 = vtanh.f32 %v985_v39 }
0x1824   :  { %v1003_v51 = vor.u32 1.1754944e-38, %v1002_v47  ;;  %vm1001_vm12 = vcmp.eq.f32.partialorder %v1000_v49, 8.507059e+37 }
0x1828   :  { %v1425_v44 = vpop.eup %1424 }
0x1829   :  { %v992_v45 = vmul.f32 %v1425_v44, %v990_v43  ;;  %vm997_vm8 = vweird.f32 %v1425_v44  ;;  %v1427_v53 = vpop.eup %1426 }
0x182a   :  { %vm998_vm11 = vmor %vm996_vm10, %vm997_vm8 }
0x182b   :  { %v993_v46 = vsub.f32 1.0, %v992_v45 }
0x182d   :  { %v994_v48 = vmul.f32 %v1425_v44, %v993_v46 }
0x182f   :  { %v995_v50 = vadd.f32 %v1425_v44, %v994_v48 }
0x1831   :  { %v999_v52 = vsel %vm998_vm11, %v1425_v44, %v995_v50 }
0x1832   :  { %v1004_v54 = vsel %vm1001_vm12, %v1003_v51, %v999_v52  ;;  %v703_v52 = vpop.f32.mrf.mxu3 }
0x1833   :  { %v1006_v55 = vsel %vm1610_vm5, %v1427_v53, %v1004_v54  ;;  %v704_v53 = vadd.f32 %v1764_v19, %v703_v52 }
0x1834   :  { %1009 = vrot.lane.b32.xlu2 %v1006_v55, %s1497_s27  ;;  %v1007_v59 = vmul.f32 %v1006_v55, %v953_v31 }
0x188e   :  { %v1010_v57 = vpop.permute.xlu2 %1009 }
0x188f   :  { %v1012_v58 = vmul.f32 %v1010_v57, %v1006_v55 }
0x1891   :  { %1014 = vrot.lane.b32.xlu0 %v1012_v58, %s1498_s28 }
0x1903   :  { %v1015_v60 = vpop.permute.xlu0 %1014 }
0x1904   :  { %v1833_v61 = vadd.f32 %v1015_v60, %v1007_v59 }
0x1906   :  { %1428 = vtanh.f32 %v1833_v61 }
0x190c   :  { %v1429_v62 = vpop.eup %1428 }
0x190d   :  { %1020 = vrot.lane.b32.xlu1 %v1429_v62, %s1497_s27 }
0x197f   :  { %v1021_v63 = vpop.permute.xlu1 %1020 }
0x1980   :  { %v1023_v2 = vmul.f32 %v1021_v63, %v1006_v55 }
0x1982   :  { %1025 = vrot.lane.b32.xlu2 %v1023_v2, %s1498_s28 }
0x19dc   :  { %v1026_v3 = vpop.permute.xlu2 %1025 }
0x19dd   :  { %1318 = vmatmul.msk.f32.vlgmr.msra.gmra.mxu2 %vm140_vm9, %v1026_v3 }
0x1a60   :  { %v1046_v15 = vpop.f32.mrf.mxu2 }
0x1a61   :  { %v1049_v16 = vadd.f32 %v1046_v15, %v701_v9 }
0x1a63   :  { %v1319_v17 = vmul.f32 -1.442695, %v1049_v16 }
0x1a65   :  { %1430 = vpow2.f32 %v1319_v17 }
0x1a6b   :  { %v1431_v18 = vpop.eup %1430 }
0x1a6c   :  { %v1054_v20 = vadd.f32 1.0, %v1431_v18 }
0x1a6e   :  { %1432 = vrcp.f32 %v1054_v20  ;;  %v1066_v24 = vand.u32 2147483648, %v1054_v20  ;;  %v1064_v0 = vand.u32 2147483647, %v1054_v20  ;;  %vm1060_vm13 = vweird.f32 %v1054_v20 }
0x1a6f   :  { %1434 = vtanh.f32 %v1049_v16 }
0x1a70   :  { %v1067_v12 = vor.u32 1.1754944e-38, %v1066_v24  ;;  %vm1065_vm15 = vcmp.eq.f32.partialorder %v1064_v0, 8.507059e+37  ;;  %1436 = vpow2.f32 %v1300_v27 }
0x1a74   :  { %v1433_v6 = vpop.eup %1432 }
0x1a75   :  { %v1056_v21 = vmul.f32 %v1433_v6, %v1054_v20  ;;  %vm1061_vm1 = vweird.f32 %v1433_v6  ;;  %v1435_v1 = vpop.eup %1434 }
0x1a76   :  { %vm1062_vm14 = vmor %vm1060_vm13, %vm1061_vm1  ;;  %v1437_v28 = vpop.eup %1436 }
0x1a77   :  { %v1057_v22 = vsub.f32 1.0, %v1056_v21  ;;  %v617_v29 = vadd.f32 1.0, %v1437_v28 }
0x1a79   :  { %v1058_v25 = vmul.f32 %v1433_v6, %v1057_v22  ;;  %1438 = vrcp.f32 %v617_v29  ;;  %v629_v37 = vand.u32 2147483648, %v617_v29  ;;  %vm623_vm2 = vweird.f32 %v617_v29 }
0x1a7a   :  { %v627_v38 = vand.u32 2147483647, %v617_v29  ;;  %1440 = vtanh.f32 %v612_v5 }
0x1a7b   :  { %v1059_v11 = vadd.f32 %v1433_v6, %v1058_v25  ;;  %v630_v10 = vor.u32 1.1754944e-38, %v629_v37 }
0x1a7c   :  { %vm628_vm4 = vcmp.eq.f32.partialorder %v627_v38, 8.507059e+37 }
0x1a7d   :  { %v1063_v13 = vsel %vm1062_vm14, %v1433_v6, %v1059_v11 }
0x1a7e   :  { %v1068_v14 = vsel %vm1065_vm15, %v1067_v12, %v1063_v13 }
0x1a7f   :  { %v1070_v7 = vsel %vm1610_vm5, %v1435_v1, %v1068_v14  ;;  %v1439_v30 = vpop.eup %1438 }
0x1a80   :  { %1073 = vrot.lane.b32.xlu0 %v1070_v7, %s1497_s27  ;;  %v619_v31 = vmul.f32 %v1439_v30, %v617_v29  ;;  %vm624_vm0 = vweird.f32 %v1439_v30  ;;  %v1441_v40 = vpop.eup %1440  ;;  %v1071_v43 = vmul.f32 %v1070_v7, %v1833_v61 }
0x1a81   :  { %vm625_vm3 = vmor %vm623_vm2, %vm624_vm0 }
0x1a82   :  { %v620_v32 = vsub.f32 1.0, %v619_v31 }
0x1a84   :  { %v621_v33 = vmul.f32 %v1439_v30, %v620_v32 }
0x1a86   :  { %v622_v35 = vadd.f32 %v1439_v30, %v621_v33 }
0x1a88   :  { %v626_v42 = vsel %vm625_vm3, %v1439_v30, %v622_v35 }
0x1a89   :  { %v631_v39 = vsel %vm628_vm4, %v630_v10, %v626_v42 }
0x1a8a   :  { %v633_v41 = vsel %vm1610_vm5, %v1441_v40, %v631_v39 }
0x1a8b   :  { %v634_v9 = vmul.f32 %v633_v41, %v1776_v56 }
0x1af2   :  { %v1074_v34 = vpop.permute.xlu0 %1073 }
0x1af3   :  { %v1076_v36 = vmul.f32 %v1074_v34, %v1070_v7 }
0x1af5   :  { %1078 = vrot.lane.b32.xlu1 %v1076_v36, %s1498_s28 }
0x1afd   :  { %636 = vrot.lane.b32.xlu1 %v633_v41, %s1497_s27 }
0x1b67   :  { %v1079_v44 = vpop.permute.xlu1 %1078 }
0x1b68   :  { %v1081_v45 = vadd.f32 %v1079_v44, %v1071_v43 }
0x1b6a   :  { %1442 = vtanh.f32 %v1081_v45 }
0x1b6f   :  { %v637_v49 = vpop.permute.xlu1 %636 }
0x1b70   :  { %v1443_v46 = vpop.eup %1442  ;;  %v639_v50 = vmul.f32 %v637_v49, %v633_v41  ;;  %v1219_v49 = vld [vmem:[#allocation2 + $0x18] sm:$0xff] }
0x1b71   :  { %1084 = vrot.lane.b32.xlu2 %v1443_v46, %s1497_s27  ;;  %1241 = vmatpush.msrb.mxu1 %v1219_v49 }
0x1bcb   :  { %v1085_v47 = vpop.permute.xlu2 %1084 }
0x1bcc   :  { %v1087_v48 = vmul.f32 %v1085_v47, %v1070_v7 }
0x1bce   :  { %1089 = vrot.lane.b32.xlu0 %v1087_v48, %s1498_s28 }
0x1bd6   :  { %641 = vrot.lane.b32.xlu0 %v639_v50, %s1498_s28  ;;  %v1218_v50 = vld [vmem:[#allocation2 + $0x10] sm:$0xff] }
0x1bd7   :  { %1242 = vmatpush.msrb.mxu1 %v1218_v50 }
0x1c40   :  { %v1090_v51 = vpop.permute.xlu0 %1089 }
0x1c41   :  { %1320 = vmatmul.msk.f32.vlgmr.msra.gmra.mxu1 %vm140_vm9, %v1090_v51  ;;  %v1217_v51 = vld [vmem:[#allocation2 + $0x8] sm:$0xff] }
0x1c42   :  { %1243 = vmatpush.msrb.mxu1 %v1217_v51 }
0x1c44   :  { %1244 = vmatpush.msrb.mxu1 %v1216_v23 }
0x1c48   :  { %v642_v8 = vpop.permute.xlu0 %641 }
0x1c49   :  { %v644_v17 = vadd.f32 %v642_v8, %v634_v9 }
0x1cbe   :  { %v1110_v54 = vpop.f32.mrf.mxu1 }
0x1cbf   :  { %v1113_v55 = vadd.f32 %v1110_v54, %v704_v53 }
0x1cc1   :  { %v1321_v57 = vmul.f32 -1.442695, %v1113_v55 }
0x1cc3   :  { %1444 = vpow2.f32 %v1321_v57 }
0x1cc9   :  { %v1445_v58 = vpop.eup %1444 }
0x1cca   :  { %v1118_v59 = vadd.f32 1.0, %v1445_v58 }
0x1ccc   :  { %1446 = vrcp.f32 %v1118_v59  ;;  %v1130_v63 = vand.u32 2147483648, %v1118_v59  ;;  %v1128_v3 = vand.u32 2147483647, %v1118_v59  ;;  %vm1124_vm7 = vweird.f32 %v1118_v59 }
0x1ccd   :  { %1448 = vtanh.f32 %v1113_v55  ;;  %v1333_v55 = vld [vmem:[%s1891_s8] ss:$0 sm:$0xff] }
0x1cce   :  { %v1131_v16 = vor.u32 1.1754944e-38, %v1130_v63  ;;  %vm1129_vm10 = vcmp.eq.f32.partialorder %v1128_v3, 8.507059e+37  ;;  %1450 = vtanh.f32 %v644_v17 }
0x1cd2   :  { %v1447_v60 = vpop.eup %1446 }
0x1cd3   :  { %v1120_v61 = vmul.f32 %v1447_v60, %v1118_v59  ;;  %vm1125_vm6 = vweird.f32 %v1447_v60  ;;  %v1449_v20 = vpop.eup %1448 }
0x1cd4   :  { %vm1126_vm8 = vmor %vm1124_vm7, %vm1125_vm6  ;;  %v1451_v22 = vpop.eup %1450 }
0x1cd5   :  { %v1121_v62 = vsub.f32 1.0, %v1120_v61 }
0x1cd7   :  { %v1122_v2 = vmul.f32 %v1447_v60, %v1121_v62 }
0x1cd9   :  { %v1123_v15 = vadd.f32 %v1447_v60, %v1122_v2 }
0x1cdb   :  { %v1127_v18 = vsel %vm1126_vm8, %v1447_v60, %v1123_v15 }
0x1cdc   :  { %v1132_v6 = vsel %vm1129_vm10, %v1131_v16, %v1127_v18 }
0x1cdd   :  { %v1134_v21 = vsel %vm1610_vm5, %v1449_v20, %v1132_v6 }
0x1cde   :  { %1137 = vrot.lane.b32.xlu2 %v1134_v21, %s1497_s27  ;;  %v1135_v11 = vmul.f32 %v1134_v21, %v1081_v45 }
0x1ce6   :  { %647 = vrot.lane.b32.xlu2 %v1451_v22, %s1497_s27 }
0x1d38   :  { %v1138_v24 = vpop.permute.xlu2 %1137 }
0x1d39   :  { %v1140_v56 = vmul.f32 %v1138_v24, %v1134_v21 }
0x1d3b   :  { %1142 = vrot.lane.b32.xlu1 %v1140_v56, %s1498_s28 }
0x1d40   :  { %v648_v25 = vpop.permute.xlu2 %647 }
0x1d41   :  { %v650_v0 = vmul.f32 %v648_v25, %v633_v41 }
0x1d43   :  { %664 = vrot.lane.b32.xlu1 %v650_v0, %s1498_s28 }
0x1dad   :  { %v1143_v12 = vpop.permute.xlu1 %1142 }
0x1dae   :  { %v1145_v13 = vadd.f32 %v1143_v12, %v1135_v11 }
0x1db0   :  { %1452 = vtanh.f32 %v1145_v13 }
0x1db5   :  { %v665_v1 = vpop.permute.xlu1 %664 }
0x1db6   :  { %v1453_v14 = vpop.eup %1452  ;;  %1308 = vmatmul.msk.f32.gmra.mxu3 %vm140_vm9, %v665_v1 }
0x1db7   :  { %1148 = vrot.lane.b32.xlu0 %v1453_v14, %s1497_s27 }
0x1e29   :  { %v1149_v7 = vpop.permute.xlu0 %1148 }
0x1e2a   :  { %v1151_v4 = vmul.f32 %v1149_v7, %v1134_v21 }
0x1e2c   :  { %1153 = vrot.lane.b32.xlu2 %v1151_v4, %s1498_s28 }
0x1e39   :  { %v706_v5 = vpop.f32.mrf.mxu3 }
0x1e3a   :  { %v707_v27 = vadd.f32 %v1764_v19, %v706_v5 }
0x1e86   :  { %v1154_v26 = vpop.permute.xlu2 %1153 }
0x1e87   :  { %1322 = vmatmul.msk.f32.vlgmr.msrb.gmra.mxu2 %vm140_vm9, %v1154_v26 }
0x1f0a   :  { %v1174_v28 = vpop.f32.mrf.mxu2 }
0x1f0b   :  { %v1177_v29 = vadd.f32 %v1174_v28, %v707_v27 }
0x1f0d   :  { %v1323_v30 = vmul.f32 -1.442695, %v1177_v29 }
0x1f0f   :  { %1454 = vpow2.f32 %v1323_v30 }
0x1f15   :  { %v1455_v31 = vpop.eup %1454 }
0x1f16   :  { %v1182_v32 = vadd.f32 1.0, %v1455_v31 }
0x1f18   :  { %1456 = vrcp.f32 %v1182_v32  ;;  %v1194_v36 = vand.u32 2147483648, %v1182_v32  ;;  %v1192_v38 = vand.u32 2147483647, %v1182_v32  ;;  %vm1188_vm12 = vweird.f32 %v1182_v32 }
0x1f19   :  { %1458 = vtanh.f32 %v1177_v29 }
0x1f1a   :  { %v1195_v10 = vor.u32 1.1754944e-38, %v1194_v36  ;;  %vm1193_vm13 = vcmp.eq.f32.partialorder %v1192_v38, 8.507059e+37 }
0x1f1e   :  { %v1457_v33 = vpop.eup %1456 }
0x1f1f   :  { %v1184_v34 = vmul.f32 %v1457_v33, %v1182_v32  ;;  %vm1189_vm11 = vweird.f32 %v1457_v33  ;;  %v1459_v39 = vpop.eup %1458 }
0x1f20   :  { %vm1190_vm1 = vmor %vm1188_vm12, %vm1189_vm11 }
0x1f21   :  { %v1185_v35 = vsub.f32 1.0, %v1184_v34 }
0x1f23   :  { %v1186_v37 = vmul.f32 %v1457_v33, %v1185_v35 }
0x1f25   :  { %v1187_v42 = vadd.f32 %v1457_v33, %v1186_v37 }
0x1f27   :  { %v1191_v19 = vsel %vm1190_vm1, %v1457_v33, %v1187_v42 }
0x1f28   :  { %v1196_v40 = vsel %vm1193_vm13, %v1195_v10, %v1191_v19 }
0x1f29   :  { %v1198_v41 = vsel %vm1610_vm5, %v1459_v39, %v1196_v40 }
0x1f2a   :  { %1201 = vrot.lane.b32.xlu0 %v1198_v41, %s1497_s27  ;;  %v1199_v45 = vmul.f32 %v1198_v41, %v1145_v13 }
0x1f9c   :  { %v1202_v43 = vpop.permute.xlu0 %1201 }
0x1f9d   :  { %v1204_v44 = vmul.f32 %v1202_v43, %v1198_v41 }
0x1f9f   :  { %1206 = vrot.lane.b32.xlu1 %v1204_v44, %s1498_s28 }
0x2011   :  { %v1207_v46 = vpop.permute.xlu1 %1206 }
0x2012   :  { %v1209_v47 = vadd.f32 %v1207_v46, %v1199_v45 }
0x2014   :  { %1460 = vtanh.f32 %v1209_v47 }
0x201a   :  { %v1461_v48 = vpop.eup %1460 }
0x201b   :  { %1212 = vrot.lane.b32.xlu2 %v1461_v48, %s1497_s27 }
0x2075   :  { %v1213_v52 = vpop.permute.xlu2 %1212 }
0x2076   :  { %v1215_v53 = vmul.f32 %v1213_v52, %v1198_v41 }
0x2078   :  { %1225 = vrot.lane.b32.xlu0 %v1215_v53, %s1498_s28 }
0x20ea   :  { %v1226_v54 = vpop.permute.xlu0 %1225 }
0x20eb   :  { %1324 = vmatmul.msk.f32.vlgmr.msrb.gmra.mxu1 %vm140_vm9, %v1226_v54 }
0x2168   :  { %v1246_v57 = vpop.f32.mrf.mxu1 }
0x2169   :  { %v1247_v58 = vadd.f32 %v1333_v55, %v1246_v57 }
0x216b   :  { %1249 = vmax.xlane.f32.xlu1 %v1247_v58 }
0x21de   :  { %v1250_v59 = vpop.xlane.xlu1 %1249 }
0x21df   :  { %v1251_v60 = vsub.f32 %v1247_v58, %v1250_v59 }
0x21e1   :  { %v1252_v61 = vmul.f32 1.442695, %v1251_v60 }
0x21e3   :  { %1462 = vpow2.f32 %v1252_v61 }
0x21e9   :  { %v1463_v62 = vpop.eup %1462 }
0x21ea   :  { %1254 = vadd.xlane.f32.xlu2 %v1463_v62 }
0x225d   :  { %v1255_v63 = vpop.xlane.xlu2 %1254 }
0x225e   :  { %1464 = vrcp.f32 %v1255_v63  ;;  %v1267_v9 = vand.u32 2147483648, %v1255_v63  ;;  %v1265_v16 = vand.u32 2147483647, %v1255_v63  ;;  %vm1261_vm9 = vweird.f32 %v1255_v63 }
0x2260   :  { %v1268_v18 = vor.u32 1.1754944e-38, %v1267_v9  ;;  %vm1266_vm15 = vcmp.eq.f32.partialorder %v1265_v16, 8.507059e+37 }
0x2264   :  { %v1465_v2 = vpop.eup %1464 }
0x2265   :  { %v1257_v3 = vmul.f32 %v1465_v2, %v1255_v63  ;;  %vm1262_vm5 = vweird.f32 %v1465_v2 }
0x2266   :  { %vm1263_vm14 = vmor %vm1261_vm9, %vm1262_vm5 }
0x2267   :  { %v1258_v8 = vsub.f32 1.0, %v1257_v3 }
0x2269   :  { %v1259_v15 = vmul.f32 %v1465_v2, %v1258_v8 }
0x226b   :  { %v1260_v17 = vadd.f32 %v1465_v2, %v1259_v15 }
0x226d   :  { %v1264_v20 = vsel %vm1263_vm14, %v1465_v2, %v1260_v17 }
0x226e   :  { %v1269_v6 = vsel %vm1266_vm15, %v1268_v18, %v1264_v20 }
0x226f   :  { %v1270_v21 = vmul.f32 %v1463_v62, %v1269_v6 }
0x2271   :  { %1271 = vst [vmem:[%s1892_s9] sm:$0xff] %v1270_v21 }
0x2272   :  { %1276 = vsyncpa [#allocation3], 1 }

</bundles_post_ra>
